<compile_context>
chip_gen: v5e
topology: v5e:2x2
jax: 0.10.0
libtpu: 0.0.40
codegen_flags: <defaults>
</compile_context>

<pallas_src>
import functools
import math

import jax
import jax.numpy as jnp
from jax import lax
from jax.experimental import pallas as pl
from jax.experimental.pallas import tpu as pltpu


# ------------------------------- configuration ------------------------------

CFG = dict(
    batch=2,
    in_chans=3,
    img_size=56,      # small stand-in for 224 / 518 (4x4 patch grid)
    patch=14,         # DINOv2 patch size
    dim=128,          # hidden dim, lane-aligned (ViT-S/B/L/G: 384/768/1024/1536)
    depth=2,
    heads=2,          # head_dim = 64, same as real DINOv2
    mlp_hidden=512,   # mlp_ratio = 4
)

LN_EPS = 1e-6         # DINOv2 LayerNorm eps
SEQ_ALIGN = 8         # pad token count to a sublane multiple


def _vmem_limit_bytes():
    # ~3/4 of physical VMEM: ~48 MiB on v7x (64 MiB/TC), ~96 MiB on v5e/v6e
    # (128 MiB).  Falls back to a conservative value if the query fails.
    try:
        cap = pltpu.get_tpu_info().vmem_capacity_bytes
    except Exception:
        cap = 64 * 1024 * 1024
    return int(min(cap * 3 // 4, 112 * 1024 * 1024))


def _mosaic(dim_sem=None):
    return pltpu.CompilerParams(dimension_semantics=dim_sem,
                                vmem_limit_bytes=_vmem_limit_bytes())


def _bcast_spec(shape):
    return pl.BlockSpec(shape, lambda *_: (0,) * len(shape))


def _ln(x, g, b):
    mu = jnp.mean(x, axis=-1, keepdims=True)
    var = jnp.mean((x - mu) ** 2, axis=-1, keepdims=True)
    return (x - mu) * lax.rsqrt(var + LN_EPS) * g + b


# --------------------------------- kernels ----------------------------------

def _embed_kernel(patch_ref, w_ref, b_ref, cls_ref, pos_ref, o_ref, *, n_patches):
    """Patch-embed matmul + bias + pos-embed + cls token, zero-padded to N_pad.
    Uses direct slice stores (no sublane-axis concatenate)."""
    n_pad, d = o_ref.shape[1], o_ref.shape[2]
    pe = jnp.dot(patch_ref[0].astype(jnp.bfloat16), w_ref[...],
                 preferred_element_type=jnp.float32) + b_ref[...]
    pos = pos_ref[...]                               # (n_tokens, D) f32
    if n_pad > n_patches + 1:                        # zero the padded tail
        o_ref[0, n_patches + 1:n_pad, :] = jnp.zeros(
            (n_pad - n_patches - 1, d), jnp.float32)
    o_ref[0, 0:1, :] = cls_ref[...] + pos[0:1, :]    # cls token row
    o_ref[0, 1:n_patches + 1, :] = pe + pos[1:, :]   # patch rows


def _block_kernel(x_ref, ln1_g, ln1_b, wq_ref, bq_ref, wk_ref, bk_ref,
                  wv_ref, bv_ref, pw_ref, pb_ref, ls1_ref,
                  ln2_g, ln2_b, w1_ref, b1_ref, w2_ref, b2_ref, ls2_ref,
                  o_ref, *, heads, head_dim, n_valid):
    """One full DINOv2 transformer block for a single batch element."""
    n_pad, d = x_ref.shape[1], x_ref.shape[2]
    scale = 1.0 / math.sqrt(head_dim)

    x = x_ref[0]                                             # (n_pad, D) f32
    h = _ln(x, ln1_g[...], ln1_b[...]).astype(jnp.bfloat16)  # LN1 once, reused

    # key-padding mask, built once per block (only the tail can be padded)
    key_idx = lax.broadcasted_iota(jnp.int32, (1, n_pad), 1)
    key_valid = key_idx < n_valid

    attn = jnp.zeros((n_pad, d), jnp.float32)
    for hi in range(heads):     # static unroll; per-head slabs on leading dims
        q = jnp.dot(h, wq_ref[hi], preferred_element_type=jnp.float32) + bq_ref[hi]
        k = jnp.dot(h, wk_ref[hi], preferred_element_type=jnp.float32) + bk_ref[hi]
        v = jnp.dot(h, wv_ref[hi], preferred_element_type=jnp.float32) + bv_ref[hi]

        s = lax.dot_general(q.astype(jnp.bfloat16), k.astype(jnp.bfloat16),
                            (((1,), (1,)), ((), ())),
                            preferred_element_type=jnp.float32) * scale
        s = jnp.where(key_valid, s, -1e30)
        m = jnp.max(s, axis=-1, keepdims=True)
        p = jnp.exp(s - m)
        inv = pl.reciprocal(jnp.sum(p, axis=-1, keepdims=True), approx=True)
        p = p * inv

        o_h = jnp.dot(p.astype(jnp.bfloat16), v.astype(jnp.bfloat16),
                      preferred_element_type=jnp.float32)     # (n_pad, head_dim)
        # Fold the head output straight into the output projection
        # (row-slab of proj_w): avoids any 64-lane concat across heads.
        attn = attn + jnp.dot(o_h.astype(jnp.bfloat16), pw_ref[hi],
                              preferred_element_type=jnp.float32)

    x = x + ls1_ref[...] * (attn + pb_ref[...])               # LayerScale + res

    # MLP branch
    h2 = _ln(x, ln2_g[...], ln2_b[...]).astype(jnp.bfloat16)
    t = jnp.dot(h2, w1_ref[...], preferred_element_type=jnp.float32) + b1_ref[...]
    # TODO(synk): PyTorch nn.GELU in DINOv2 is exact (erf); tanh approximation here.
    t = jax.nn.gelu(t, approximate=True)
    t = jnp.dot(t.astype(jnp.bfloat16), w2_ref[...],
                preferred_element_type=jnp.float32) + b2_ref[...]
    o_ref[0] = x + ls2_ref[...] * t


def _layernorm_kernel(x_ref, g_ref, b_ref, o_ref):
    o_ref[...] = _ln(x_ref[...], g_ref[...], b_ref[...])


# ----------------------------- kernel wrappers -------------------------------

def patch_embed(patches, w, b, cls_tok, pos, n_pad):
    B, n_patches, K = patches.shape
    D = w.shape[1]
    return pl.pallas_call(
        functools.partial(_embed_kernel, n_patches=n_patches),
        out_shape=jax.ShapeDtypeStruct((B, n_pad, D), jnp.float32),
        grid=(B,),
        in_specs=[
            pl.BlockSpec((1, n_patches, K), lambda bi: (bi, 0, 0)),
            _bcast_spec((K, D)),
            _bcast_spec((1, D)),
            _bcast_spec((1, D)),
            _bcast_spec(pos.shape),
        ],
        out_specs=pl.BlockSpec((1, n_pad, D), lambda bi: (bi, 0, 0)),
        compiler_params=_mosaic(("parallel",)),
    )(patches, w, b, cls_tok, pos)


def transformer_block(x, blk, heads, n_valid):
    B, n_pad, D = x.shape
    head_dim = D // heads
    H = blk["fc1_w"].shape[1]
    return pl.pallas_call(
        functools.partial(_block_kernel, heads=heads, head_dim=head_dim,
                          n_valid=n_valid),
        out_shape=jax.ShapeDtypeStruct((B, n_pad, D), jnp.float32),
        grid=(B,),
        in_specs=[
            pl.BlockSpec((1, n_pad, D), lambda b: (b, 0, 0)),          # x
            _bcast_spec((1, D)), _bcast_spec((1, D)),                  # ln1
            _bcast_spec((heads, D, head_dim)), _bcast_spec((heads, 1, head_dim)),  # wq/bq
            _bcast_spec((heads, D, head_dim)), _bcast_spec((heads, 1, head_dim)),  # wk/bk
            _bcast_spec((heads, D, head_dim)), _bcast_spec((heads, 1, head_dim)),  # wv/bv
            _bcast_spec((heads, head_dim, D)), _bcast_spec((1, D)),    # proj
            _bcast_spec((1, D)),                                       # ls1
            _bcast_spec((1, D)), _bcast_spec((1, D)),                  # ln2
            _bcast_spec((D, H)), _bcast_spec((1, H)),                  # fc1
            _bcast_spec((H, D)), _bcast_spec((1, D)),                  # fc2
            _bcast_spec((1, D)),                                       # ls2
        ],
        out_specs=pl.BlockSpec((1, n_pad, D), lambda b: (b, 0, 0)),
        input_output_aliases={0: 0},      # residual stream updated in place
        compiler_params=_mosaic(("parallel",)),
    )(x, blk["ln1_g"], blk["ln1_b"], blk["wq"], blk["bq"], blk["wk"], blk["bk"],
      blk["wv"], blk["bv"], blk["proj_w"], blk["proj_b"], blk["ls1"],
      blk["ln2_g"], blk["ln2_b"], blk["fc1_w"], blk["fc1_b"],
      blk["fc2_w"], blk["fc2_b"], blk["ls2"])


def cls_layernorm(x, g, b):
    B, D = x.shape
    return pl.pallas_call(
        _layernorm_kernel,
        out_shape=jax.ShapeDtypeStruct((B, D), jnp.float32),
        in_specs=[_bcast_spec((B, D)), _bcast_spec((1, D)), _bcast_spec((1, D))],
        out_specs=_bcast_spec((B, D)),
        compiler_params=_mosaic(),
    )(x, g, b)


# ------------------------------- model setup ---------------------------------

def init_params(key, cfg):
    C, p, D, H = cfg["in_chans"], cfg["patch"], cfg["dim"], cfg["mlp_hidden"]
    heads = cfg["heads"]
    hd = D // heads
    n_patches = (cfg["img_size"] // p) ** 2
    n_tokens = n_patches + 1

    def nrm(k, shape, scale=0.02, dtype=jnp.float32):
        return (scale * jax.random.normal(k, shape, dtype=jnp.float32)).astype(dtype)

    keys = iter(jax.random.split(key, 3 + cfg["depth"]))
    params = dict(
        patch_w=nrm(next(keys), (C * p * p, D), dtype=jnp.bfloat16),
        patch_b=jnp.zeros((1, D), jnp.float32),
        cls_token=nrm(next(keys), (1, D)),
        pos_embed=nrm(next(keys), (n_tokens, D)),
        ln_f_g=jnp.ones((1, D), jnp.float32),
        ln_f_b=jnp.zeros((1, D), jnp.float32),
        blocks=[],
    )
    for _ in range(cfg["depth"]):
        k1, k2, k3, k4, k5, k6 = jax.random.split(next(keys), 6)
        params["blocks"].append(dict(
            ln1_g=jnp.ones((1, D), jnp.float32),
            ln1_b=jnp.zeros((1, D), jnp.float32),
            # per-head weight slabs -> attention indexes only leading dims
            wq=nrm(k1, (heads, D, hd), dtype=jnp.bfloat16),
            bq=jnp.zeros((heads, 1, hd), jnp.float32),
            wk=nrm(k2, (heads, D, hd), dtype=jnp.bfloat16),
            bk=jnp.zeros((heads, 1, hd), jnp.float32),
            wv=nrm(k3, (heads, D, hd), dtype=jnp.bfloat16),
            bv=jnp.zeros((heads, 1, hd), jnp.float32),
            proj_w=nrm(k4, (heads, hd, D), dtype=jnp.bfloat16),
            proj_b=jnp.zeros((1, D), jnp.float32),
            ls1=jnp.full((1, D), 1e-5, jnp.float32),      # LayerScale gamma
            ln2_g=jnp.ones((1, D), jnp.float32),
            ln2_b=jnp.zeros((1, D), jnp.float32),
            fc1_w=nrm(k5, (D, H), dtype=jnp.bfloat16),
            fc1_b=jnp.zeros((1, H), jnp.float32),
            fc2_w=nrm(k6, (H, D), dtype=jnp.bfloat16),
            fc2_b=jnp.zeros((1, D), jnp.float32),
            ls2=jnp.full((1, D), 1e-5, jnp.float32),
        ))
    return params


# ------------------------------ forward pass ----------------------------------

def dinov2_forward(params, frame, cfg):
    """frame: (B, C, H, W) float32 NCHW -> cls-token embedding (B, dim)."""
    B, C, Hh, Ww = frame.shape
    p, D, heads = cfg["patch"], cfg["dim"], cfg["heads"]
    assert D % heads == 0
    Hg, Wg = Hh // p, Ww // p
    n_patches = Hg * Wg
    n_tokens = n_patches + 1
    n_pad = ((n_tokens + SEQ_ALIGN - 1) // SEQ_ALIGN) * SEQ_ALIGN

    # Patch extraction: Conv2d(C, D, kernel=p, stride=p) == unfold + matmul.
    patches = (frame.reshape(B, C, Hg, p, Wg, p)
               .transpose(0, 2, 4, 1, 3, 5)
               .reshape(B, n_patches, C * p * p))

    # Patch embedding + bias + pos-embed + cls token (padded to n_pad tokens).
    x = patch_embed(patches, params["patch_w"], params["patch_b"],
                    params["cls_token"], params["pos_embed"], n_pad)

    # One fused pallas_call per transformer block (residual stream in place).
    for blk in params["blocks"]:
        x = transformer_block(x, blk, heads, n_tokens)

    # DINOv2 forward returns the class token after the final LayerNorm.
    cls = x[:, 0, :]
    return cls_layernorm(cls, params["ln_f_g"], params["ln_f_b"])


# ---------------------------------- main --------------------------------------

if __name__ == "__main__":
    key = jax.random.PRNGKey(0)
    k_param, k_frame = jax.random.split(key)

    params = init_params(k_param, CFG)
    frame = jax.random.normal(
        k_frame,
        (CFG["batch"], CFG["in_chans"], CFG["img_size"], CFG["img_size"]),
        dtype=jnp.float32,
    )

    fwd = jax.jit(functools.partial(dinov2_forward, cfg=CFG))
    embedding = jax.block_until_ready(fwd(params, frame))

    assert embedding.shape == (CFG["batch"], CFG["dim"])
    assert bool(jnp.all(jnp.isfinite(embedding)))
    print("KERNEL_OK")
</pallas_src>

<mosaic_0001>
module attributes {stable_mosaic.version = 11 : i64} {
  func.func @_embed_kernel(%arg0: i32, %arg1: memref<1x16x588xf32, #tpu.memory_space<vmem>>, %arg2: memref<588x128xbf16, #tpu.memory_space<vmem>>, %arg3: memref<1x128xf32, #tpu.memory_space<vmem>>, %arg4: memref<1x128xf32, #tpu.memory_space<vmem>>, %arg5: memref<17x128xf32, #tpu.memory_space<vmem>>, %arg6: memref<1x24x128xf32, #tpu.memory_space<vmem>>) attributes {dimension_semantics = [#tpu.dimension_semantics<parallel>], iteration_bounds = array<i64: 2>, scalar_prefetch = 0 : i64, scratch_operands = 0 : i64, tpu.core_type = #tpu.core_type<tc>, window_params = [{transform_indices = @transform_0, window_bounds = array<i64: 1, 16, 588>}, {pipeline_mode = #tpu.pipeline_mode<synchronous>, transform_indices = @transform_1, window_bounds = array<i64: 588, 128>}, {pipeline_mode = #tpu.pipeline_mode<synchronous>, transform_indices = @transform_2, window_bounds = array<i64: 1, 128>}, {pipeline_mode = #tpu.pipeline_mode<synchronous>, transform_indices = @transform_3, window_bounds = array<i64: 1, 128>}, {pipeline_mode = #tpu.pipeline_mode<synchronous>, transform_indices = @transform_4, window_bounds = array<i64: 17, 128>}, {transform_indices = @transform_5, window_bounds = array<i64: 1, 24, 128>}]} {
    %c0 = arith.constant 0 : index
    %c0_0 = arith.constant 0 : index
    %c0_1 = arith.constant 0 : index
    %0 = vector.load %arg1[%c0, %c0_0, %c0_1] : memref<1x16x588xf32, #tpu.memory_space<vmem>>, vector<1x16x588xf32>
    %1 = vector.shape_cast %0 : vector<1x16x588xf32> to vector<16x588xf32>
    %2 = arith.truncf %1 : vector<16x588xf32> to vector<16x588xbf16>
    %c0_2 = arith.constant 0 : index
    %c0_3 = arith.constant 0 : index
    %3 = vector.load %arg2[%c0_2, %c0_3] : memref<588x128xbf16, #tpu.memory_space<vmem>>, vector<588x128xbf16>
    %cst = arith.constant dense<0.000000e+00> : vector<16x128xf32>
    %4 = tpu.matmul %2, %3, %cst {dimension_numbers = #tpu.dot_dimension_numbers<[1], [0], [0], [1], [0, 0, 1, 1], [], []>} : vector<16x588xbf16>, vector<588x128xbf16>, vector<16x128xf32> -> vector<16x128xf32>
    %c0_4 = arith.constant 0 : index
    %c0_5 = arith.constant 0 : index
    %5 = vector.load %arg3[%c0_4, %c0_5] : memref<1x128xf32, #tpu.memory_space<vmem>>, vector<1x128xf32>
    %6 = vector.broadcast %5 : vector<1x128xf32> to vector<16x128xf32>
    %7 = arith.addf %4, %6 : vector<16x128xf32>
    %c0_6 = arith.constant 0 : index
    %c0_7 = arith.constant 0 : index
    %8 = vector.load %arg5[%c0_6, %c0_7] : memref<17x128xf32, #tpu.memory_space<vmem>>, vector<17x128xf32>
    %cst_8 = arith.constant 0.000000e+00 : f32
    %9 = vector.broadcast %cst_8 : f32 to vector<7x128xf32>
    %c0_9 = arith.constant 0 : index
    %c17 = arith.constant 17 : index
    %c0_10 = arith.constant 0 : index
    %10 = vector.load %arg6[%c0_9, %c17, %c0_10] : memref<1x24x128xf32, #tpu.memory_space<vmem>>, vector<1x7x128xf32>
    %11 = vector.shape_cast %10 : vector<1x7x128xf32> to vector<7x128xf32>
    %12 = vector.shape_cast %9 : vector<7x128xf32> to vector<1x7x128xf32>
    tpu.vector_store %arg6[%c0_9, %c17, %c0_10], %12 {strides = array<i32>} : memref<1x24x128xf32, #tpu.memory_space<vmem>>, vector<1x7x128xf32>,
    %c0_11 = arith.constant 0 : index
    %c0_12 = arith.constant 0 : index
    %13 = vector.load %arg4[%c0_11, %c0_12] : memref<1x128xf32, #tpu.memory_space<vmem>>, vector<1x128xf32>
    %14 = vector.extract_strided_slice %8 {offsets = [0, 0], sizes = [1, 128], strides = [1, 1]} : vector<17x128xf32> to vector<1x128xf32>
    %15 = arith.addf %13, %14 : vector<1x128xf32>
    %c0_13 = arith.constant 0 : index
    %c0_14 = arith.constant 0 : index
    %c0_15 = arith.constant 0 : index
    %16 = vector.load %arg6[%c0_13, %c0_14, %c0_15] : memref<1x24x128xf32, #tpu.memory_space<vmem>>, vector<1x1x128xf32>
    %17 = vector.shape_cast %16 : vector<1x1x128xf32> to vector<1x128xf32>
    %18 = vector.shape_cast %15 : vector<1x128xf32> to vector<1x1x128xf32>
    tpu.vector_store %arg6[%c0_13, %c0_14, %c0_15], %18 {strides = array<i32>} : memref<1x24x128xf32, #tpu.memory_space<vmem>>, vector<1x1x128xf32>,
    %19 = vector.extract_strided_slice %8 {offsets = [1, 0], sizes = [16, 128], strides = [1, 1]} : vector<17x128xf32> to vector<16x128xf32>
    %20 = arith.addf %7, %19 : vector<16x128xf32>
    %c0_16 = arith.constant 0 : index
    %c1 = arith.constant 1 : index
    %c0_17 = arith.constant 0 : index
    %21 = vector.load %arg6[%c0_16, %c1, %c0_17] : memref<1x24x128xf32, #tpu.memory_space<vmem>>, vector<1x16x128xf32>
    %22 = vector.shape_cast %21 : vector<1x16x128xf32> to vector<16x128xf32>
    %23 = vector.shape_cast %20 : vector<16x128xf32> to vector<1x16x128xf32>
    tpu.vector_store %arg6[%c0_16, %c1, %c0_17], %23 {strides = array<i32>} : memref<1x24x128xf32, #tpu.memory_space<vmem>>, vector<1x16x128xf32>,
    return
  }
  func.func @transform_0(%arg0: i32) -> (i32, i32, i32) {
    %c0_i32 = arith.constant 0 : i32
    %c0_i32_0 = arith.constant 0 : i32
    %c0_i32_1 = arith.constant 0 : i32
    return %arg0, %c0_i32, %c0_i32_0 : i32, i32, i32
  }
  func.func @transform_1(%arg0: i32) -> (i32, i32) {
    %c0_i32 = arith.constant 0 : i32
    %c0_i32_0 = arith.constant 0 : i32
    %c0_i32_1 = arith.constant 0 : i32
    return %c0_i32, %c0_i32_0 : i32, i32
  }
  func.func @transform_2(%arg0: i32) -> (i32, i32) {
    %c0_i32 = arith.constant 0 : i32
    %c0_i32_0 = arith.constant 0 : i32
    %c0_i32_1 = arith.constant 0 : i32
    return %c0_i32, %c0_i32_0 : i32, i32
  }
  func.func @transform_3(%arg0: i32) -> (i32, i32) {
    %c0_i32 = arith.constant 0 : i32
    %c0_i32_0 = arith.constant 0 : i32
    %c0_i32_1 = arith.constant 0 : i32
    return %c0_i32, %c0_i32_0 : i32, i32
  }
  func.func @transform_4(%arg0: i32) -> (i32, i32) {
    %c0_i32 = arith.constant 0 : i32
    %c0_i32_0 = arith.constant 0 : i32
    %c0_i32_1 = arith.constant 0 : i32
    return %c0_i32, %c0_i32_0 : i32, i32
  }
  func.func @transform_5(%arg0: i32) -> (i32, i32, i32) {
    %c0_i32 = arith.constant 0 : i32
    %c0_i32_0 = arith.constant 0 : i32
    %c0_i32_1 = arith.constant 0 : i32
    return %arg0, %c0_i32, %c0_i32_0 : i32, i32, i32
  }
}

module attributes {stable_mosaic.version = 11 : i64} {
  func.func @_block_kernel(%arg0: i32, %arg1: memref<1x24x128xf32, #tpu.memory_space<vmem>>, %arg2: memref<1x128xf32, #tpu.memory_space<vmem>>, %arg3: memref<1x128xf32, #tpu.memory_space<vmem>>, %arg4: memref<2x128x64xbf16, #tpu.memory_space<vmem>>, %arg5: memref<2x1x64xf32, #tpu.memory_space<vmem>>, %arg6: memref<2x128x64xbf16, #tpu.memory_space<vmem>>, %arg7: memref<2x1x64xf32, #tpu.memory_space<vmem>>, %arg8: memref<2x128x64xbf16, #tpu.memory_space<vmem>>, %arg9: memref<2x1x64xf32, #tpu.memory_space<vmem>>, %arg10: memref<2x64x128xbf16, #tpu.memory_space<vmem>>, %arg11: memref<1x128xf32, #tpu.memory_space<vmem>>, %arg12: memref<1x128xf32, #tpu.memory_space<vmem>>, %arg13: memref<1x128xf32, #tpu.memory_space<vmem>>, %arg14: memref<1x128xf32, #tpu.memory_space<vmem>>, %arg15: memref<128x512xbf16, #tpu.memory_space<vmem>>, %arg16: memref<1x512xf32, #tpu.memory_space<vmem>>, %arg17: memref<512x128xbf16, #tpu.memory_space<vmem>>, %arg18: memref<1x128xf32, #tpu.memory_space<vmem>>, %arg19: memref<1x128xf32, #tpu.memory_space<vmem>>, %arg20: memref<1x24x128xf32, #tpu.memory_space<vmem>>) attributes {dimension_semantics = [#tpu.dimension_semantics<parallel>], iteration_bounds = array<i64: 2>, scalar_prefetch = 0 : i64, scratch_operands = 0 : i64, tpu.core_type = #tpu.core_type<tc>, window_params = [{transform_indices = @transform_0, window_bounds = array<i64: 1, 24, 128>}, {pipeline_mode = #tpu.pipeline_mode<synchronous>, transform_indices = @transform_1, window_bounds = array<i64: 1, 128>}, {pipeline_mode = #tpu.pipeline_mode<synchronous>, transform_indices = @transform_2, window_bounds = array<i64: 1, 128>}, {pipeline_mode = #tpu.pipeline_mode<synchronous>, transform_indices = @transform_3, window_bounds = array<i64: 2, 128, 64>}, {pipeline_mode = #tpu.pipeline_mode<synchronous>, transform_indices = @transform_4, window_bounds = array<i64: 2, 1, 64>}, {pipeline_mode = #tpu.pipeline_mode<synchronous>, transform_indices = @transform_5, window_bounds = array<i64: 2, 128, 64>}, {pipeline_mode = #tpu.pipeline_mode<synchronous>, transform_indices = @transform_6, window_bounds = array<i64: 2, 1, 64>}, {pipeline_mode = #tpu.pipeline_mode<synchronous>, transform_indices = @transform_7, window_bounds = array<i64: 2, 128, 64>}, {pipeline_mode = #tpu.pipeline_mode<synchronous>, transform_indices = @transform_8, window_bounds = array<i64: 2, 1, 64>}, {pipeline_mode = #tpu.pipeline_mode<synchronous>, transform_indices = @transform_9, window_bounds = array<i64: 2, 64, 128>}, {pipeline_mode = #tpu.pipeline_mode<synchronous>, transform_indices = @transform_10, window_bounds = array<i64: 1, 128>}, {pipeline_mode = #tpu.pipeline_mode<synchronous>, transform_indices = @transform_11, window_bounds = array<i64: 1, 128>}, {pipeline_mode = #tpu.pipeline_mode<synchronous>, transform_indices = @transform_12, window_bounds = array<i64: 1, 128>}, {pipeline_mode = #tpu.pipeline_mode<synchronous>, transform_indices = @transform_13, window_bounds = array<i64: 1, 128>}, {pipeline_mode = #tpu.pipeline_mode<synchronous>, transform_indices = @transform_14, window_bounds = array<i64: 128, 512>}, {pipeline_mode = #tpu.pipeline_mode<synchronous>, transform_indices = @transform_15, window_bounds = array<i64: 1, 512>}, {pipeline_mode = #tpu.pipeline_mode<synchronous>, transform_indices = @transform_16, window_bounds = array<i64: 512, 128>}, {pipeline_mode = #tpu.pipeline_mode<synchronous>, transform_indices = @transform_17, window_bounds = array<i64: 1, 128>}, {pipeline_mode = #tpu.pipeline_mode<synchronous>, transform_indices = @transform_18, window_bounds = array<i64: 1, 128>}, {transform_indices = @transform_19, window_bounds = array<i64: 1, 24, 128>}]} {
    %c0 = arith.constant 0 : index
    %c0_0 = arith.constant 0 : index
    %c0_1 = arith.constant 0 : index
    %0 = vector.load %arg1[%c0, %c0_0, %c0_1] : memref<1x24x128xf32, #tpu.memory_space<vmem>>, vector<1x24x128xf32>
    %1 = vector.shape_cast %0 : vector<1x24x128xf32> to vector<24x128xf32>
    %c0_2 = arith.constant 0 : index
    %c0_3 = arith.constant 0 : index
    %2 = vector.load %arg2[%c0_2, %c0_3] : memref<1x128xf32, #tpu.memory_space<vmem>>, vector<1x128xf32>
    %c0_4 = arith.constant 0 : index
    %c0_5 = arith.constant 0 : index
    %3 = vector.load %arg3[%c0_4, %c0_5] : memref<1x128xf32, #tpu.memory_space<vmem>>, vector<1x128xf32>
    %cst = arith.constant dense<0.000000e+00> : vector<24xf32>
    %4 = vector.multi_reduction <add>, %1, %cst [1] : vector<24x128xf32> to vector<24xf32>
    %5 = vector.shape_cast %4 : vector<24xf32> to vector<24x1xf32>
    %cst_6 = arith.constant 1.280000e+02 : f32
    %6 = vector.broadcast %cst_6 : f32 to vector<24x1xf32>
    %7 = arith.divf %5, %6 : vector<24x1xf32>
    %8 = vector.broadcast %7 : vector<24x1xf32> to vector<24x128xf32>
    %9 = arith.subf %1, %8 : vector<24x128xf32>
    %10 = arith.mulf %9, %9 : vector<24x128xf32>
    %cst_7 = arith.constant dense<0.000000e+00> : vector<24xf32>
    %11 = vector.multi_reduction <add>, %10, %cst_7 [1] : vector<24x128xf32> to vector<24xf32>
    %12 = vector.shape_cast %11 : vector<24xf32> to vector<24x1xf32>
    %cst_8 = arith.constant 1.280000e+02 : f32
    %13 = vector.broadcast %cst_8 : f32 to vector<24x1xf32>
    %14 = arith.divf %12, %13 : vector<24x1xf32>
    %15 = vector.broadcast %7 : vector<24x1xf32> to vector<24x128xf32>
    %16 = arith.subf %1, %15 : vector<24x128xf32>
    %cst_9 = arith.constant 9.99999997E-7 : f32
    %17 = vector.broadcast %cst_9 : f32 to vector<24x1xf32>
    %18 = arith.addf %14, %17 : vector<24x1xf32>
    %19 = math.rsqrt %18 : vector<24x1xf32>
    %20 = vector.broadcast %19 : vector<24x1xf32> to vector<24x128xf32>
    %21 = arith.mulf %16, %20 : vector<24x128xf32>
    %22 = vector.broadcast %2 : vector<1x128xf32> to vector<24x128xf32>
    %23 = arith.mulf %21, %22 : vector<24x128xf32>
    %24 = vector.broadcast %3 : vector<1x128xf32> to vector<24x128xf32>
    %25 = arith.addf %23, %24 : vector<24x128xf32>
    %26 = arith.truncf %25 : vector<24x128xf32> to vector<24x128xbf16>
    %27 = tpu.iota {dimensions = array<i32: 1>} : vector<1x24xi32>
    %c17_i32 = arith.constant 17 : i32
    %28 = vector.broadcast %c17_i32 : i32 to vector<1x24xi32>
    %29 = arith.cmpi slt, %27, %28 : vector<1x24xi32>
    %cst_10 = arith.constant 0.000000e+00 : f32
    %30 = vector.broadcast %cst_10 : f32 to vector<24x128xf32>
    %c0_11 = arith.constant 0 : index
    %c0_12 = arith.constant 0 : index
    %c0_13 = arith.constant 0 : index
    %31 = vector.load %arg4[%c0_11, %c0_12, %c0_13] : memref<2x128x64xbf16, #tpu.memory_space<vmem>>, vector<1x128x64xbf16>
    %32 = vector.shape_cast %31 : vector<1x128x64xbf16> to vector<128x64xbf16>
    %cst_14 = arith.constant dense<0.000000e+00> : vector<24x64xf32>
    %33 = tpu.matmul %26, %32, %cst_14 {dimension_numbers = #tpu.dot_dimension_numbers<[1], [0], [0], [1], [0, 0, 1, 1], [], []>} : vector<24x128xbf16>, vector<128x64xbf16>, vector<24x64xf32> -> vector<24x64xf32>
    %c0_15 = arith.constant 0 : index
    %c0_16 = arith.constant 0 : index
    %c0_17 = arith.constant 0 : index
    %34 = vector.load %arg5[%c0_15, %c0_16, %c0_17] : memref<2x1x64xf32, #tpu.memory_space<vmem>>, vector<1x1x64xf32>
    %35 = vector.shape_cast %34 : vector<1x1x64xf32> to vector<1x64xf32>
    %36 = vector.broadcast %35 : vector<1x64xf32> to vector<24x64xf32>
    %37 = arith.addf %33, %36 : vector<24x64xf32>
    %c0_18 = arith.constant 0 : index
    %c0_19 = arith.constant 0 : index
    %c0_20 = arith.constant 0 : index
    %38 = vector.load %arg6[%c0_18, %c0_19, %c0_20] : memref<2x128x64xbf16, #tpu.memory_space<vmem>>, vector<1x128x64xbf16>
    %39 = vector.shape_cast %38 : vector<1x128x64xbf16> to vector<128x64xbf16>
    %cst_21 = arith.constant dense<0.000000e+00> : vector<24x64xf32>
    %40 = tpu.matmul %26, %39, %cst_21 {dimension_numbers = #tpu.dot_dimension_numbers<[1], [0], [0], [1], [0, 0, 1, 1], [], []>} : vector<24x128xbf16>, vector<128x64xbf16>, vector<24x64xf32> -> vector<24x64xf32>
    %c0_22 = arith.constant 0 : index
    %c0_23 = arith.constant 0 : index
    %c0_24 = arith.constant 0 : index
    %41 = vector.load %arg7[%c0_22, %c0_23, %c0_24] : memref<2x1x64xf32, #tpu.memory_space<vmem>>, vector<1x1x64xf32>
    %42 = vector.shape_cast %41 : vector<1x1x64xf32> to vector<1x64xf32>
    %43 = vector.broadcast %42 : vector<1x64xf32> to vector<24x64xf32>
    %44 = arith.addf %40, %43 : vector<24x64xf32>
    %c0_25 = arith.constant 0 : index
    %c0_26 = arith.constant 0 : index
    %c0_27 = arith.constant 0 : index
    %45 = vector.load %arg8[%c0_25, %c0_26, %c0_27] : memref<2x128x64xbf16, #tpu.memory_space<vmem>>, vector<1x128x64xbf16>
    %46 = vector.shape_cast %45 : vector<1x128x64xbf16> to vector<128x64xbf16>
    %cst_28 = arith.constant dense<0.000000e+00> : vector<24x64xf32>
    %47 = tpu.matmul %26, %46, %cst_28 {dimension_numbers = #tpu.dot_dimension_numbers<[1], [0], [0], [1], [0, 0, 1, 1], [], []>} : vector<24x128xbf16>, vector<128x64xbf16>, vector<24x64xf32> -> vector<24x64xf32>
    %c0_29 = arith.constant 0 : index
    %c0_30 = arith.constant 0 : index
    %c0_31 = arith.constant 0 : index
    %48 = vector.load %arg9[%c0_29, %c0_30, %c0_31] : memref<2x1x64xf32, #tpu.memory_space<vmem>>, vector<1x1x64xf32>
    %49 = vector.shape_cast %48 : vector<1x1x64xf32> to vector<1x64xf32>
    %50 = vector.broadcast %49 : vector<1x64xf32> to vector<24x64xf32>
    %51 = arith.addf %47, %50 : vector<24x64xf32>
    %52 = arith.truncf %37 : vector<24x64xf32> to vector<24x64xbf16>
    %53 = arith.truncf %44 : vector<24x64xf32> to vector<24x64xbf16>
    %cst_32 = arith.constant dense<0.000000e+00> : vector<24x24xf32>
    %54 = tpu.matmul %52, %53, %cst_32 {dimension_numbers = #tpu.dot_dimension_numbers<[1], [1], [0], [0], [0, 0, 1, 0], [], []>} : vector<24x64xbf16>, vector<24x64xbf16>, vector<24x24xf32> -> vector<24x24xf32>
    %cst_33 = arith.constant 1.250000e-01 : f32
    %55 = vector.broadcast %cst_33 : f32 to vector<24x24xf32>
    %56 = arith.mulf %54, %55 : vector<24x24xf32>
    %cst_34 = arith.constant -1.000000e+30 : f32
    %57 = vector.shape_cast %29 : vector<1x24xi1> to vector<1x24xi1>
    %58 = vector.broadcast %57 : vector<1x24xi1> to vector<24x24xi1>
    %59 = vector.broadcast %cst_34 : f32 to vector<24x24xf32>
    %60 = arith.select %58, %56, %59 : vector<24x24xi1>, vector<24x24xf32>
    %cst_35 = arith.constant dense<0xFF800000> : vector<24xf32>
    %61 = vector.multi_reduction <maximumf>, %60, %cst_35 [1] : vector<24x24xf32> to vector<24xf32>
    %62 = vector.shape_cast %61 : vector<24xf32> to vector<24x1xf32>
    %63 = vector.broadcast %62 : vector<24x1xf32> to vector<24x24xf32>
    %64 = arith.subf %60, %63 : vector<24x24xf32>
    %65 = math.exp %64 : vector<24x24xf32>
    %cst_36 = arith.constant dense<0.000000e+00> : vector<24xf32>
    %66 = vector.multi_reduction <add>, %65, %cst_36 [1] : vector<24x24xf32> to vector<24xf32>
    %67 = vector.shape_cast %66 : vector<24xf32> to vector<24x1xf32>
    %68 = tpu.reciprocal %67 {approx = true} : vector<24x1xf32> -> vector<24x1xf32>
    %69 = vector.broadcast %68 : vector<24x1xf32> to vector<24x24xf32>
    %70 = arith.mulf %65, %69 : vector<24x24xf32>
    %71 = arith.truncf %70 : vector<24x24xf32> to vector<24x24xbf16>
    %72 = arith.truncf %51 : vector<24x64xf32> to vector<24x64xbf16>
    %cst_37 = arith.constant dense<0.000000e+00> : vector<24x64xf32>
    %73 = tpu.matmul %71, %72, %cst_37 {dimension_numbers = #tpu.dot_dimension_numbers<[1], [0], [0], [1], [0, 0, 1, 1], [], []>} : vector<24x24xbf16>, vector<24x64xbf16>, vector<24x64xf32> -> vector<24x64xf32>
    %74 = arith.truncf %73 : vector<24x64xf32> to vector<24x64xbf16>
    %c0_38 = arith.constant 0 : index
    %c0_39 = arith.constant 0 : index
    %c0_40 = arith.constant 0 : index
    %75 = vector.load %arg10[%c0_38, %c0_39, %c0_40] : memref<2x64x128xbf16, #tpu.memory_space<vmem>>, vector<1x64x128xbf16>
    %76 = vector.shape_cast %75 : vector<1x64x128xbf16> to vector<64x128xbf16>
    %cst_41 = arith.constant dense<0.000000e+00> : vector<24x128xf32>
    %77 = tpu.matmul %74, %76, %cst_41 {dimension_numbers = #tpu.dot_dimension_numbers<[1], [0], [0], [1], [0, 0, 1, 1], [], []>} : vector<24x64xbf16>, vector<64x128xbf16>, vector<24x128xf32> -> vector<24x128xf32>
    %78 = arith.addf %30, %77 : vector<24x128xf32>
    %c1 = arith.constant 1 : index
    %c0_42 = arith.constant 0 : index
    %c0_43 = arith.constant 0 : index
    %79 = vector.load %arg4[%c1, %c0_42, %c0_43] : memref<2x128x64xbf16, #tpu.memory_space<vmem>>, vector<1x128x64xbf16>
    %80 = vector.shape_cast %79 : vector<1x128x64xbf16> to vector<128x64xbf16>
    %cst_44 = arith.constant dense<0.000000e+00> : vector<24x64xf32>
    %81 = tpu.matmul %26, %80, %cst_44 {dimension_numbers = #tpu.dot_dimension_numbers<[1], [0], [0], [1], [0, 0, 1, 1], [], []>} : vector<24x128xbf16>, vector<128x64xbf16>, vector<24x64xf32> -> vector<24x64xf32>
    %c1_45 = arith.constant 1 : index
    %c0_46 = arith.constant 0 : index
    %c0_47 = arith.constant 0 : index
    %82 = vector.load %arg5[%c1_45, %c0_46, %c0_47] : memref<2x1x64xf32, #tpu.memory_space<vmem>>, vector<1x1x64xf32>
    %83 = vector.shape_cast %82 : vector<1x1x64xf32> to vector<1x64xf32>
    %84 = vector.broadcast %83 : vector<1x64xf32> to vector<24x64xf32>
    %85 = arith.addf %81, %84 : vector<24x64xf32>
    %c1_48 = arith.constant 1 : index
    %c0_49 = arith.constant 0 : index
    %c0_50 = arith.constant 0 : index
    %86 = vector.load %arg6[%c1_48, %c0_49, %c0_50] : memref<2x128x64xbf16, #tpu.memory_space<vmem>>, vector<1x128x64xbf16>
    %87 = vector.shape_cast %86 : vector<1x128x64xbf16> to vector<128x64xbf16>
    %cst_51 = arith.constant dense<0.000000e+00> : vector<24x64xf32>
    %88 = tpu.matmul %26, %87, %cst_51 {dimension_numbers = #tpu.dot_dimension_numbers<[1], [0], [0], [1], [0, 0, 1, 1], [], []>} : vector<24x128xbf16>, vector<128x64xbf16>, vector<24x64xf32> -> vector<24x64xf32>
    %c1_52 = arith.constant 1 : index
    %c0_53 = arith.constant 0 : index
    %c0_54 = arith.constant 0 : index
    %89 = vector.load %arg7[%c1_52, %c0_53, %c0_54] : memref<2x1x64xf32, #tpu.memory_space<vmem>>, vector<1x1x64xf32>
    %90 = vector.shape_cast %89 : vector<1x1x64xf32> to vector<1x64xf32>
    %91 = vector.broadcast %90 : vector<1x64xf32> to vector<24x64xf32>
    %92 = arith.addf %88, %91 : vector<24x64xf32>
    %c1_55 = arith.constant 1 : index
    %c0_56 = arith.constant 0 : index
    %c0_57 = arith.constant 0 : index
    %93 = vector.load %arg8[%c1_55, %c0_56, %c0_57] : memref<2x128x64xbf16, #tpu.memory_space<vmem>>, vector<1x128x64xbf16>
    %94 = vector.shape_cast %93 : vector<1x128x64xbf16> to vector<128x64xbf16>
    %cst_58 = arith.constant dense<0.000000e+00> : vector<24x64xf32>
    %95 = tpu.matmul %26, %94, %cst_58 {dimension_numbers = #tpu.dot_dimension_numbers<[1], [0], [0], [1], [0, 0, 1, 1], [], []>} : vector<24x128xbf16>, vector<128x64xbf16>, vector<24x64xf32> -> vector<24x64xf32>
    %c1_59 = arith.constant 1 : index
    %c0_60 = arith.constant 0 : index
    %c0_61 = arith.constant 0 : index
    %96 = vector.load %arg9[%c1_59, %c0_60, %c0_61] : memref<2x1x64xf32, #tpu.memory_space<vmem>>, vector<1x1x64xf32>
    %97 = vector.shape_cast %96 : vector<1x1x64xf32> to vector<1x64xf32>
    %98 = vector.broadcast %97 : vector<1x64xf32> to vector<24x64xf32>
    %99 = arith.addf %95, %98 : vector<24x64xf32>
    %100 = arith.truncf %85 : vector<24x64xf32> to vector<24x64xbf16>
    %101 = arith.truncf %92 : vector<24x64xf32> to vector<24x64xbf16>
    %cst_62 = arith.constant dense<0.000000e+00> : vector<24x24xf32>
    %102 = tpu.matmul %100, %101, %cst_62 {dimension_numbers = #tpu.dot_dimension_numbers<[1], [1], [0], [0], [0, 0, 1, 0], [], []>} : vector<24x64xbf16>, vector<24x64xbf16>, vector<24x24xf32> -> vector<24x24xf32>
    %cst_63 = arith.constant 1.250000e-01 : f32
    %103 = vector.broadcast %cst_63 : f32 to vector<24x24xf32>
    %104 = arith.mulf %102, %103 : vector<24x24xf32>
    %cst_64 = arith.constant -1.000000e+30 : f32
    %105 = vector.shape_cast %29 : vector<1x24xi1> to vector<1x24xi1>
    %106 = vector.broadcast %105 : vector<1x24xi1> to vector<24x24xi1>
    %107 = vector.broadcast %cst_64 : f32 to vector<24x24xf32>
    %108 = arith.select %106, %104, %107 : vector<24x24xi1>, vector<24x24xf32>
    %cst_65 = arith.constant dense<0xFF800000> : vector<24xf32>
    %109 = vector.multi_reduction <maximumf>, %108, %cst_65 [1] : vector<24x24xf32> to vector<24xf32>
    %110 = vector.shape_cast %109 : vector<24xf32> to vector<24x1xf32>
    %111 = vector.broadcast %110 : vector<24x1xf32> to vector<24x24xf32>
    %112 = arith.subf %108, %111 : vector<24x24xf32>
    %113 = math.exp %112 : vector<24x24xf32>
    %cst_66 = arith.constant dense<0.000000e+00> : vector<24xf32>
    %114 = vector.multi_reduction <add>, %113, %cst_66 [1] : vector<24x24xf32> to vector<24xf32>
    %115 = vector.shape_cast %114 : vector<24xf32> to vector<24x1xf32>
    %116 = tpu.reciprocal %115 {approx = true} : vector<24x1xf32> -> vector<24x1xf32>
    %117 = vector.broadcast %116 : vector<24x1xf32> to vector<24x24xf32>
    %118 = arith.mulf %113, %117 : vector<24x24xf32>
    %119 = arith.truncf %118 : vector<24x24xf32> to vector<24x24xbf16>
    %120 = arith.truncf %99 : vector<24x64xf32> to vector<24x64xbf16>
    %cst_67 = arith.constant dense<0.000000e+00> : vector<24x64xf32>
    %121 = tpu.matmul %119, %120, %cst_67 {dimension_numbers = #tpu.dot_dimension_numbers<[1], [0], [0], [1], [0, 0, 1, 1], [], []>} : vector<24x24xbf16>, vector<24x64xbf16>, vector<24x64xf32> -> vector<24x64xf32>
    %122 = arith.truncf %121 : vector<24x64xf32> to vector<24x64xbf16>
    %c1_68 = arith.constant 1 : index
    %c0_69 = arith.constant 0 : index
    %c0_70 = arith.constant 0 : index
    %123 = vector.load %arg10[%c1_68, %c0_69, %c0_70] : memref<2x64x128xbf16, #tpu.memory_space<vmem>>, vector<1x64x128xbf16>
    %124 = vector.shape_cast %123 : vector<1x64x128xbf16> to vector<64x128xbf16>
    %cst_71 = arith.constant dense<0.000000e+00> : vector<24x128xf32>
    %125 = tpu.matmul %122, %124, %cst_71 {dimension_numbers = #tpu.dot_dimension_numbers<[1], [0], [0], [1], [0, 0, 1, 1], [], []>} : vector<24x64xbf16>, vector<64x128xbf16>, vector<24x128xf32> -> vector<24x128xf32>
    %126 = arith.addf %78, %125 : vector<24x128xf32>
    %c0_72 = arith.constant 0 : index
    %c0_73 = arith.constant 0 : index
    %127 = vector.load %arg12[%c0_72, %c0_73] : memref<1x128xf32, #tpu.memory_space<vmem>>, vector<1x128xf32>
    %c0_74 = arith.constant 0 : index
    %c0_75 = arith.constant 0 : index
    %128 = vector.load %arg11[%c0_74, %c0_75] : memref<1x128xf32, #tpu.memory_space<vmem>>, vector<1x128xf32>
    %129 = vector.broadcast %128 : vector<1x128xf32> to vector<24x128xf32>
    %130 = arith.addf %126, %129 : vector<24x128xf32>
    %131 = vector.broadcast %127 : vector<1x128xf32> to vector<24x128xf32>
    %132 = arith.mulf %131, %130 : vector<24x128xf32>
    %133 = arith.addf %1, %132 : vector<24x128xf32>
    %c0_76 = arith.constant 0 : index
    %c0_77 = arith.constant 0 : index
    %134 = vector.load %arg13[%c0_76, %c0_77] : memref<1x128xf32, #tpu.memory_space<vmem>>, vector<1x128xf32>
    %c0_78 = arith.constant 0 : index
    %c0_79 = arith.constant 0 : index
    %135 = vector.load %arg14[%c0_78, %c0_79] : memref<1x128xf32, #tpu.memory_space<vmem>>, vector<1x128xf32>
    %cst_80 = arith.constant dense<0.000000e+00> : vector<24xf32>
    %136 = vector.multi_reduction <add>, %133, %cst_80 [1] : vector<24x128xf32> to vector<24xf32>
    %137 = vector.shape_cast %136 : vector<24xf32> to vector<24x1xf32>
    %cst_81 = arith.constant 1.280000e+02 : f32
    %138 = vector.broadcast %cst_81 : f32 to vector<24x1xf32>
    %139 = arith.divf %137, %138 : vector<24x1xf32>
    %140 = vector.broadcast %139 : vector<24x1xf32> to vector<24x128xf32>
    %141 = arith.subf %133, %140 : vector<24x128xf32>
    %142 = arith.mulf %141, %141 : vector<24x128xf32>
    %cst_82 = arith.constant dense<0.000000e+00> : vector<24xf32>
    %143 = vector.multi_reduction <add>, %142, %cst_82 [1] : vector<24x128xf32> to vector<24xf32>
    %144 = vector.shape_cast %143 : vector<24xf32> to vector<24x1xf32>
    %cst_83 = arith.constant 1.280000e+02 : f32
    %145 = vector.broadcast %cst_83 : f32 to vector<24x1xf32>
    %146 = arith.divf %144, %145 : vector<24x1xf32>
    %147 = vector.broadcast %139 : vector<24x1xf32> to vector<24x128xf32>
    %148 = arith.subf %133, %147 : vector<24x128xf32>
    %cst_84 = arith.constant 9.99999997E-7 : f32
    %149 = vector.broadcast %cst_84 : f32 to vector<24x1xf32>
    %150 = arith.addf %146, %149 : vector<24x1xf32>
    %151 = math.rsqrt %150 : vector<24x1xf32>
    %152 = vector.broadcast %151 : vector<24x1xf32> to vector<24x128xf32>
    %153 = arith.mulf %148, %152 : vector<24x128xf32>
    %154 = vector.broadcast %134 : vector<1x128xf32> to vector<24x128xf32>
    %155 = arith.mulf %153, %154 : vector<24x128xf32>
    %156 = vector.broadcast %135 : vector<1x128xf32> to vector<24x128xf32>
    %157 = arith.addf %155, %156 : vector<24x128xf32>
    %158 = arith.truncf %157 : vector<24x128xf32> to vector<24x128xbf16>
    %c0_85 = arith.constant 0 : index
    %c0_86 = arith.constant 0 : index
    %159 = vector.load %arg15[%c0_85, %c0_86] : memref<128x512xbf16, #tpu.memory_space<vmem>>, vector<128x512xbf16>
    %cst_87 = arith.constant dense<0.000000e+00> : vector<24x512xf32>
    %160 = tpu.matmul %158, %159, %cst_87 {dimension_numbers = #tpu.dot_dimension_numbers<[1], [0], [0], [1], [0, 0, 1, 1], [], []>} : vector<24x128xbf16>, vector<128x512xbf16>, vector<24x512xf32> -> vector<24x512xf32>
    %c0_88 = arith.constant 0 : index
    %c0_89 = arith.constant 0 : index
    %161 = vector.load %arg16[%c0_88, %c0_89] : memref<1x512xf32, #tpu.memory_space<vmem>>, vector<1x512xf32>
    %162 = vector.broadcast %161 : vector<1x512xf32> to vector<24x512xf32>
    %163 = arith.addf %160, %162 : vector<24x512xf32>
    %164 = arith.mulf %163, %163 : vector<24x512xf32>
    %165 = arith.mulf %163, %164 : vector<24x512xf32>
    %cst_90 = arith.constant 4.471500e-02 : f32
    %166 = vector.broadcast %cst_90 : f32 to vector<24x512xf32>
    %167 = arith.mulf %166, %165 : vector<24x512xf32>
    %168 = arith.addf %163, %167 : vector<24x512xf32>
    %cst_91 = arith.constant 0.797884583 : f32
    %169 = vector.broadcast %cst_91 : f32 to vector<24x512xf32>
    %170 = arith.mulf %169, %168 : vector<24x512xf32>
    %171 = math.tanh %170 : vector<24x512xf32>
    %cst_92 = arith.constant 1.000000e+00 : f32
    %172 = vector.broadcast %cst_92 : f32 to vector<24x512xf32>
    %173 = arith.addf %172, %171 : vector<24x512xf32>
    %cst_93 = arith.constant 5.000000e-01 : f32
    %174 = vector.broadcast %cst_93 : f32 to vector<24x512xf32>
    %175 = arith.mulf %174, %173 : vector<24x512xf32>
    %176 = arith.mulf %163, %175 : vector<24x512xf32>
    %177 = arith.truncf %176 : vector<24x512xf32> to vector<24x512xbf16>
    %c0_94 = arith.constant 0 : index
    %c0_95 = arith.constant 0 : index
    %178 = vector.load %arg17[%c0_94, %c0_95] : memref<512x128xbf16, #tpu.memory_space<vmem>>, vector<512x128xbf16>
    %cst_96 = arith.constant dense<0.000000e+00> : vector<24x128xf32>
    %179 = tpu.matmul %177, %178, %cst_96 {dimension_numbers = #tpu.dot_dimension_numbers<[1], [0], [0], [1], [0, 0, 1, 1], [], []>} : vector<24x512xbf16>, vector<512x128xbf16>, vector<24x128xf32> -> vector<24x128xf32>
    %c0_97 = arith.constant 0 : index
    %c0_98 = arith.constant 0 : index
    %180 = vector.load %arg18[%c0_97, %c0_98] : memref<1x128xf32, #tpu.memory_space<vmem>>, vector<1x128xf32>
    %181 = vector.broadcast %180 : vector<1x128xf32> to vector<24x128xf32>
    %182 = arith.addf %179, %181 : vector<24x128xf32>
    %c0_99 = arith.constant 0 : index
    %c0_100 = arith.constant 0 : index
    %183 = vector.load %arg19[%c0_99, %c0_100] : memref<1x128xf32, #tpu.memory_space<vmem>>, vector<1x128xf32>
    %184 = vector.broadcast %183 : vector<1x128xf32> to vector<24x128xf32>
    %185 = arith.mulf %184, %182 : vector<24x128xf32>
    %186 = arith.addf %133, %185 : vector<24x128xf32>
    %c0_101 = arith.constant 0 : index
    %c0_102 = arith.constant 0 : index
    %c0_103 = arith.constant 0 : index
    %187 = vector.load %arg20[%c0_101, %c0_102, %c0_103] : memref<1x24x128xf32, #tpu.memory_space<vmem>>, vector<1x24x128xf32>
    %188 = vector.shape_cast %187 : vector<1x24x128xf32> to vector<24x128xf32>
    %189 = vector.shape_cast %186 : vector<24x128xf32> to vector<1x24x128xf32>
    tpu.vector_store %arg20[%c0_101, %c0_102, %c0_103], %189 {strides = array<i32>} : memref<1x24x128xf32, #tpu.memory_space<vmem>>, vector<1x24x128xf32>,
    return
  }
  func.func @transform_0(%arg0: i32) -> (i32, i32, i32) {
    %c0_i32 = arith.constant 0 : i32
    %c0_i32_0 = arith.constant 0 : i32
    %c0_i32_1 = arith.constant 0 : i32
    return %arg0, %c0_i32, %c0_i32_0 : i32, i32, i32
  }
  func.func @transform_1(%arg0: i32) -> (i32, i32) {
    %c0_i32 = arith.constant 0 : i32
    %c0_i32_0 = arith.constant 0 : i32
    %c0_i32_1 = arith.constant 0 : i32
    return %c0_i32, %c0_i32_0 : i32, i32
  }
  func.func @transform_2(%arg0: i32) -> (i32, i32) {
    %c0_i32 = arith.constant 0 : i32
    %c0_i32_0 = arith.constant 0 : i32
    %c0_i32_1 = arith.constant 0 : i32
    return %c0_i32, %c0_i32_0 : i32, i32
  }
  func.func @transform_3(%arg0: i32) -> (i32, i32, i32) {
    %c0_i32 = arith.constant 0 : i32
    %c0_i32_0 = arith.constant 0 : i32
    %c0_i32_1 = arith.constant 0 : i32
    %c0_i32_2 = arith.constant 0 : i32
    return %c0_i32, %c0_i32_0, %c0_i32_1 : i32, i32, i32
  }
  func.func @transform_4(%arg0: i32) -> (i32, i32, i32) {
    %c0_i32 = arith.constant 0 : i32
    %c0_i32_0 = arith.constant 0 : i32
    %c0_i32_1 = arith.constant 0 : i32
    %c0_i32_2 = arith.constant 0 : i32
    return %c0_i32, %c0_i32_0, %c0_i32_1 : i32, i32, i32
  }
  func.func @transform_5(%arg0: i32) -> (i32, i32, i32) {
    %c0_i32 = arith.constant 0 : i32
    %c0_i32_0 = arith.constant 0 : i32
    %c0_i32_1 = arith.constant 0 : i32
    %c0_i32_2 = arith.constant 0 : i32
    return %c0_i32, %c0_i32_0, %c0_i32_1 : i32, i32, i32
  }
  func.func @transform_6(%arg0: i32) -> (i32, i32, i32) {
    %c0_i32 = arith.constant 0 : i32
    %c0_i32_0 = arith.constant 0 : i32
    %c0_i32_1 = arith.constant 0 : i32
    %c0_i32_2 = arith.constant 0 : i32
    return %c0_i32, %c0_i32_0, %c0_i32_1 : i32, i32, i32
  }
  func.func @transform_7(%arg0: i32) -> (i32, i32, i32) {
    %c0_i32 = arith.constant 0 : i32
    %c0_i32_0 = arith.constant 0 : i32
    %c0_i32_1 = arith.constant 0 : i32
    %c0_i32_2 = arith.constant 0 : i32
    return %c0_i32, %c0_i32_0, %c0_i32_1 : i32, i32, i32
  }
  func.func @transform_8(%arg0: i32) -> (i32, i32, i32) {
    %c0_i32 = arith.constant 0 : i32
    %c0_i32_0 = arith.constant 0 : i32
    %c0_i32_1 = arith.constant 0 : i32
    %c0_i32_2 = arith.constant 0 : i32
    return %c0_i32, %c0_i32_0, %c0_i32_1 : i32, i32, i32
  }
  func.func @transform_9(%arg0: i32) -> (i32, i32, i32) {
    %c0_i32 = arith.constant 0 : i32
    %c0_i32_0 = arith.constant 0 : i32
    %c0_i32_1 = arith.constant 0 : i32
    %c0_i32_2 = arith.constant 0 : i32
    return %c0_i32, %c0_i32_0, %c0_i32_1 : i32, i32, i32
  }
  func.func @transform_10(%arg0: i32) -> (i32, i32) {
    %c0_i32 = arith.constant 0 : i32
    %c0_i32_0 = arith.constant 0 : i32
    %c0_i32_1 = arith.constant 0 : i32
    return %c0_i32, %c0_i32_0 : i32, i32
  }
  func.func @transform_11(%arg0: i32) -> (i32, i32) {
    %c0_i32 = arith.constant 0 : i32
    %c0_i32_0 = arith.constant 0 : i32
    %c0_i32_1 = arith.constant 0 : i32
    return %c0_i32, %c0_i32_0 : i32, i32
  }
  func.func @transform_12(%arg0: i32) -> (i32, i32) {
    %c0_i32 = arith.constant 0 : i32
    %c0_i32_0 = arith.constant 0 : i32
    %c0_i32_1 = arith.constant 0 : i32
    return %c0_i32, %c0_i32_0 : i32, i32
  }
  func.func @transform_13(%arg0: i32) -> (i32, i32) {
    %c0_i32 = arith.constant 0 : i32
    %c0_i32_0 = arith.constant 0 : i32
    %c0_i32_1 = arith.constant 0 : i32
    return %c0_i32, %c0_i32_0 : i32, i32
  }
  func.func @transform_14(%arg0: i32) -> (i32, i32) {
    %c0_i32 = arith.constant 0 : i32
    %c0_i32_0 = arith.constant 0 : i32
    %c0_i32_1 = arith.constant 0 : i32
    return %c0_i32, %c0_i32_0 : i32, i32
  }
  func.func @transform_15(%arg0: i32) -> (i32, i32) {
    %c0_i32 = arith.constant 0 : i32
    %c0_i32_0 = arith.constant 0 : i32
    %c0_i32_1 = arith.constant 0 : i32
    return %c0_i32, %c0_i32_0 : i32, i32
  }
  func.func @transform_16(%arg0: i32) -> (i32, i32) {
    %c0_i32 = arith.constant 0 : i32
    %c0_i32_0 = arith.constant 0 : i32
    %c0_i32_1 = arith.constant 0 : i32
    return %c0_i32, %c0_i32_0 : i32, i32
  }
  func.func @transform_17(%arg0: i32) -> (i32, i32) {
    %c0_i32 = arith.constant 0 : i32
    %c0_i32_0 = arith.constant 0 : i32
    %c0_i32_1 = arith.constant 0 : i32
    return %c0_i32, %c0_i32_0 : i32, i32
  }
  func.func @transform_18(%arg0: i32) -> (i32, i32) {
    %c0_i32 = arith.constant 0 : i32
    %c0_i32_0 = arith.constant 0 : i32
    %c0_i32_1 = arith.constant 0 : i32
    return %c0_i32, %c0_i32_0 : i32, i32
  }
  func.func @transform_19(%arg0: i32) -> (i32, i32, i32) {
    %c0_i32 = arith.constant 0 : i32
    %c0_i32_0 = arith.constant 0 : i32
    %c0_i32_1 = arith.constant 0 : i32
    return %arg0, %c0_i32, %c0_i32_0 : i32, i32, i32
  }
}

module attributes {stable_mosaic.version = 11 : i64} {
  func.func @_layernorm_kernel(%arg0: memref<2x128xf32, #tpu.memory_space<vmem>>, %arg1: memref<1x128xf32, #tpu.memory_space<vmem>>, %arg2: memref<1x128xf32, #tpu.memory_space<vmem>>, %arg3: memref<2x128xf32, #tpu.memory_space<vmem>>) attributes {dimension_semantics = [], scalar_prefetch = 0 : i64, scratch_operands = 0 : i64, tpu.core_type = #tpu.core_type<tc>} {
    %c0 = arith.constant 0 : index
    %c0_0 = arith.constant 0 : index
    %0 = vector.load %arg0[%c0, %c0_0] : memref<2x128xf32, #tpu.memory_space<vmem>>, vector<2x128xf32>
    %c0_1 = arith.constant 0 : index
    %c0_2 = arith.constant 0 : index
    %1 = vector.load %arg1[%c0_1, %c0_2] : memref<1x128xf32, #tpu.memory_space<vmem>>, vector<1x128xf32>
    %c0_3 = arith.constant 0 : index
    %c0_4 = arith.constant 0 : index
    %2 = vector.load %arg2[%c0_3, %c0_4] : memref<1x128xf32, #tpu.memory_space<vmem>>, vector<1x128xf32>
    %cst = arith.constant dense<0.000000e+00> : vector<2xf32>
    %3 = vector.multi_reduction <add>, %0, %cst [1] : vector<2x128xf32> to vector<2xf32>
    %4 = vector.shape_cast %3 : vector<2xf32> to vector<2x1xf32>
    %cst_5 = arith.constant 1.280000e+02 : f32
    %5 = vector.broadcast %cst_5 : f32 to vector<2x1xf32>
    %6 = arith.divf %4, %5 : vector<2x1xf32>
    %7 = vector.broadcast %6 : vector<2x1xf32> to vector<2x128xf32>
    %8 = arith.subf %0, %7 : vector<2x128xf32>
    %9 = arith.mulf %8, %8 : vector<2x128xf32>
    %cst_6 = arith.constant dense<0.000000e+00> : vector<2xf32>
    %10 = vector.multi_reduction <add>, %9, %cst_6 [1] : vector<2x128xf32> to vector<2xf32>
    %11 = vector.shape_cast %10 : vector<2xf32> to vector<2x1xf32>
    %cst_7 = arith.constant 1.280000e+02 : f32
    %12 = vector.broadcast %cst_7 : f32 to vector<2x1xf32>
    %13 = arith.divf %11, %12 : vector<2x1xf32>
    %14 = vector.broadcast %6 : vector<2x1xf32> to vector<2x128xf32>
    %15 = arith.subf %0, %14 : vector<2x128xf32>
    %cst_8 = arith.constant 9.99999997E-7 : f32
    %16 = vector.broadcast %cst_8 : f32 to vector<2x1xf32>
    %17 = arith.addf %13, %16 : vector<2x1xf32>
    %18 = math.rsqrt %17 : vector<2x1xf32>
    %19 = vector.broadcast %18 : vector<2x1xf32> to vector<2x128xf32>
    %20 = arith.mulf %15, %19 : vector<2x128xf32>
    %21 = vector.broadcast %1 : vector<1x128xf32> to vector<2x128xf32>
    %22 = arith.mulf %20, %21 : vector<2x128xf32>
    %23 = vector.broadcast %2 : vector<1x128xf32> to vector<2x128xf32>
    %24 = arith.addf %22, %23 : vector<2x128xf32>
    %c0_9 = arith.constant 0 : index
    %c0_10 = arith.constant 0 : index
    %25 = vector.load %arg3[%c0_9, %c0_10] : memref<2x128xf32, #tpu.memory_space<vmem>>, vector<2x128xf32>
    tpu.vector_store %arg3[%c0_9, %c0_10], %24 {strides = array<i32>} : memref<2x128xf32, #tpu.memory_space<vmem>>, vector<2x128xf32>,
    return
  }
}

</mosaic_0001>

<bundles_post_ra>
// kernel: dinov2_forward.4
= control target key start
LH: loop header
LB: loop body
LE: loop exit
PB: predicated region body
PF: predicated region fallthrough
CT: control target
= control target key end

     0   :  { %s941_s18 = smov 0   ;;  %s1115_s0 = inlined_call_operand.vmem [shape: f32[2,16,588], index: 0, kind: input, shape index: {}]   ;;  %s1116_s1 = inlined_call_operand.vmem [shape: bf16[588,128], index: 1, kind: input, shape index: {}]   ;;  %s1117_s2 = inlined_call_operand.vmem [shape: f32[1,128], index: 2, kind: input, shape index: {}]   ;;  %s1118_s3 = inlined_call_operand.vmem [shape: f32[1,128], index: 3, kind: input, shape index: {}]   ;;  %s1119_s4 = inlined_call_operand.vmem [shape: f32[17,128], index: 4, kind: input, shape index: {}]   ;;  %s1120_s5 = inlined_call_operand.vmem [shape: f32[2,24,128], index: 5, kind: output, shape index: {}]  }
   0x1 LB: > { %s695_s19 = sadd.s32 4294967295, %s908_s18   ;;  %p699_p0 = scmp.ge.s32.totalorder %s908_s18, 1  ;;  %s908_s18 = sphi %s941_s18, %s15_s18  }
   0x2   : > { %p187_p1 = scmp.lt.s32.totalorder %s908_s18, 3 }
   0x4   : > { %p188_p2 = pnand %p699_p0, %p187_p1 }
   0x5   : > { %p215_p3 = scmp.lt.s32.totalorder (!%p188_p2), %s695_s19, 1 }
   0x6   : > { %191 = sbr.rel (%p188_p2) target bundleno = 202 (0xca), region = 40 }
   0xb   : > { %v860_v0 = vld [vmem:[%s1116_s1 + $0x38] sm:$0xff]  ;;  %v859_v4 = vld [vmem:[%s1116_s1 + $0x30] sm:$0xff]  ;;  %v858_v8 = vld [vmem:[%s1116_s1 + $0x28] sm:$0xff]  ;;  %s1122_s19 = smov (!%p215_p3, %s695_s19), 1  ;;  %vm544_vm0 = vcmask 1045504   ;;  %vm540_vm1 = vcmask 621568  }
   0xc   : > { %v876_v1 = vld [vmem:[%s1116_s1 + $0xb8] sm:$0xff]  ;;  %548 = vmatpush.bf16.msra.mxu0 %v860_v0  ;;  %v875_v5 = vld [vmem:[%s1116_s1 + $0xb0] sm:$0xff]  ;;  %v874_v9 = vld [vmem:[%s1116_s1 + $0xa8] sm:$0xff]  ;;  %s890_s16 = smul.u32 80, %s1122_s19  ;;  %v910_v57 = vmov 0.0   ;;  %vm628_vm2 = vcmask 1046528  }
   0xd   : > { %v884_v2 = vld [vmem:[%s1116_s1 + $0xf8] sm:$0xff]  ;;  %576 = vmatpush.bf16.msra.mxu2 %v876_v1  ;;  %v883_v6 = vld [vmem:[%s1116_s1 + $0xf0] sm:$0xff]  ;;  %v882_v10 = vld [vmem:[%s1116_s1 + $0xe8] sm:$0xff]  ;;  %s891_s6 = smul.u32 24, %s1122_s19 }
   0xe   : > { %v868_v3 = vld [vmem:[%s1116_s1 + $0x78] sm:$0xff]  ;;  %590 = vmatpush.bf16.msra.mxu3 %v884_v2  ;;  %v867_v7 = vld [vmem:[%s1116_s1 + $0x70] sm:$0xff]  ;;  %v866_v11 = vld [vmem:[%s1116_s1 + $0x68] sm:$0xff]  ;;  %s1043_s8 = scalar_lea.vmem %s1115_s0, %s890_s16 }
   0xf   : > { %562 = vmatpush.bf16.msra.mxu1 %v868_v3  ;;  %v857_v12 = vld [vmem:[%s1116_s1 + $0x20] sm:$0xff]  ;;  %v856_v16 = vld [vmem:[%s1116_s1 + $0x18] sm:$0xff]  ;;  %v855_v20 = vld [vmem:[%s1116_s1 + $0x10] sm:$0xff]  ;;  %s1089_s10 = scalar_lea.vmem %s1120_s5, %s891_s6 }
  0x10   : > { %549 = vmatpush.bf16.msra.mxu0 %v859_v4  ;;  %v873_v13 = vld [vmem:[%s1116_s1 + $0xa0] sm:$0xff]  ;;  %v872_v17 = vld [vmem:[%s1116_s1 + $0x98] sm:$0xff]  ;;  %v871_v21 = vld [vmem:[%s1116_s1 + $0x90] sm:$0xff]  ;;  %621 = vst [vmem:[%s1089_s10 + $0x11] sm:$0x7f] %v910_v57 }
  0x11   : > { %577 = vmatpush.bf16.msra.mxu2 %v875_v5  ;;  %v881_v14 = vld [vmem:[%s1116_s1 + $0xe0] sm:$0xff]  ;;  %v880_v18 = vld [vmem:[%s1116_s1 + $0xd8] sm:$0xff]  ;;  %v879_v22 = vld [vmem:[%s1116_s1 + $0xd0] sm:$0xff] }
  0x12   : > { %591 = vmatpush.bf16.msra.mxu3 %v883_v6  ;;  %v865_v15 = vld [vmem:[%s1116_s1 + $0x60] sm:$0xff]  ;;  %v864_v19 = vld [vmem:[%s1116_s1 + $0x58] sm:$0xff]  ;;  %v863_v23 = vld [vmem:[%s1116_s1 + $0x50] sm:$0xff] }
  0x13   : > { %563 = vmatpush.bf16.msra.mxu1 %v867_v7  ;;  %v848_v24 = vld [vmem:[%s1116_s1 + $0x120] sm:$0xf]  ;;  %v889_v25 = vld [vmem:[%s1116_s1 + $0x120] sm:$0x30]  ;;  %v854_v26 = vld [vmem:[%s1116_s1 + $0x8] sm:$0xff] }
  0x14   : > { %550 = vmatpush.bf16.msra.mxu0 %v858_v8  ;;  %v870_v27 = vld [vmem:[%s1116_s1 + $0x88] sm:$0xff]  ;;  %v849_v30 = vor.u32 %v889_v25, %v848_v24  ;;  %v853_v31 = vld [vmem:[%s1116_s1] sm:$0xff]  ;;  %v228_v35 = vld [vmem:[%s1043_s8 + $0x10] sm:$0xff] }
  0x15   : > { %578 = vmatpush.bf16.msra.mxu2 %v874_v9  ;;  %v878_v28 = vld [vmem:[%s1116_s1 + $0xc8] sm:$0xff]  ;;  %v869_v32 = vld [vmem:[%s1116_s1 + $0x80] sm:$0xff]  ;;  %v233_v36 = vld [vmem:[%s1043_s8 + $0x38] sm:$0xff] }
  0x16   : > { %592 = vmatpush.bf16.msra.mxu3 %v882_v10  ;;  %v862_v29 = vld [vmem:[%s1116_s1 + $0x48] sm:$0xff]  ;;  %v226_v33 = vld [vmem:[%s1043_s8] sm:$0xff]  ;;  %v229_v38 = vld [vmem:[%s1043_s8 + $0x18] sm:$0xff]  ;;  %v546_v40 = vsel %vm544_vm0, %v849_v30, 0  ;;  %v238_v45 = vpack.c.bf16 %v233_v36, %v228_v35 }
  0x17   : > { %564 = vmatpush.bf16.msra.mxu1 %v866_v11  ;;  %v231_v34 = vld [vmem:[%s1043_s8 + $0x28] sm:$0xff]  ;;  %v877_v37 = vld [vmem:[%s1116_s1 + $0xc0] sm:$0xff]  ;;  %v232_v43 = vld [vmem:[%s1043_s8 + $0x30] sm:$0xff] }
  0x18   : > { %551 = vmatpush.bf16.msra.mxu0 %v857_v12  ;;  %v234_v39 = vld [vmem:[%s1043_s8 + $0x40] sm:$0xff]  ;;  %v227_v42 = vld [vmem:[%s1043_s8 + $0x8] sm:$0xff]  ;;  %v236_v44 = vpack.c.bf16 %v231_v34, %v226_v33  ;;  %v888_v48 = vld [vmem:[%s1116_s1 + $0x118] sm:$0xff] }
  0x19   : > { %579 = vmatpush.bf16.msra.mxu2 %v873_v13  ;;  %v861_v41 = vld [vmem:[%s1116_s1 + $0x40] sm:$0xff]  ;;  %v239_v46 = vpack.c.bf16 %v234_v39, %v229_v38  ;;  %v237_v47 = vpack.c.bf16 %v232_v43, %v227_v42  ;;  %v887_v49 = vld [vmem:[%s1116_s1 + $0x110] sm:$0xff]  ;;  %v886_v50 = vld [vmem:[%s1116_s1 + $0x108] sm:$0xff] }
  0x1a   : > { %593 = vmatpush.bf16.msra.mxu3 %v881_v14  ;;  %v885_v51 = vld [vmem:[%s1116_s1 + $0x100] sm:$0xff]  ;;  %v235_v53 = vld [vmem:[%s1043_s8 + $0x48] sm:$0xff] }
  0x1b   : > { %565 = vmatpush.bf16.msra.mxu1 %v865_v15  ;;  %v230_v52 = vld [vmem:[%s1043_s8 + $0x20] sm:$0xff]  ;;  %v619_v2 = vld [vmem:[%s1119_s4 + $0x8] sm:$0xff]  ;;  %v620_v15 = vld [vmem:[%s1119_s4 + $0x10] sm:$0x1] }
  0x1c   : > { %552 = vmatpush.bf16.msra.mxu0 %v856_v16  ;;  %v240_v54 = vpack.c.bf16 %v235_v53, %v230_v52  ;;  %v618_v55 = vld [vmem:[%s1119_s4] sm:$0xff]  ;;  %v630_v6 = vrot.slane %v619_v2, 1 }
  0x1d   : > { %580 = vmatpush.bf16.msra.mxu2 %v872_v17  ;;  %v622_v56 = vld [vmem:[%s1118_s3] sm:$0x1]  ;;  %v629_v5 = vrot.slane %v618_v55, 1 }
  0x1e   : > { %594 = vmatpush.bf16.msra.mxu3 %v880_v18  ;;  %v623_v58 = vadd.f32 %v622_v56, %v618_v55  ;;  %v901_v59 = vld [vmem:[%s1117_s2] ss:$0 sm:$0xff] }
  0x1f   : > { %566 = vmatpush.bf16.msra.mxu1 %v864_v19  ;;  %v631_v12 = vsel %vm628_vm2, %v629_v5, %v630_v6  ;;  %v632_v19 = vrot.slane %v620_v15, 1 }
  0x20   : > { %553 = vmatpush.bf16.msra.mxu0 %v855_v20  ;;  %624 = vst [vmem:[%s1089_s10] sm:$0x1] %v623_v58 }
  0x21   : > { %581 = vmatpush.bf16.msra.mxu2 %v871_v21 }
  0x22   : > { %595 = vmatpush.bf16.msra.mxu3 %v879_v22  ;;  %v633_v22 = vsel %vm628_vm2, %v630_v6, %v632_v19 }
  0x23   : > { %567 = vmatpush.bf16.msra.mxu1 %v863_v23 }
  0x24   : > { %554 = vmatpush.bf16.msra.mxu0 %v854_v26 }
  0x25   : > { %582 = vmatpush.bf16.msra.mxu2 %v870_v27 }
  0x26   : > { %596 = vmatpush.bf16.msra.mxu3 %v878_v28 }
  0x27   : > { %568 = vmatpush.bf16.msra.mxu1 %v862_v29 }
  0x28   : > { %555 = vmatpush.bf16.msra.mxu0 %v853_v31 }
  0x29   : > { %583 = vmatpush.bf16.msra.mxu2 %v869_v32 }
  0x2a   : > { %597 = vmatpush.bf16.msra.mxu3 %v877_v37 }
  0x2b   : > { %569 = vmatpush.bf16.msra.mxu1 %v861_v41  ;;  %556 = vmatmul.bf16.vlgmr.msra.gmra.mxu0 %v236_v44 }
  0x2c   : > { %607 = vmatpush.bf16.msrb.mxu0 %v546_v40  ;;  %584 = vmatmul.bf16.vlgmr.msra.gmra.mxu2 %v238_v45 }
  0x2d   : > { %598 = vmatmul.bf16.vlgmr.msra.gmra.mxu3 %v239_v46 }
  0x2e   : > { %570 = vmatmul.bf16.vlgmr.msra.gmra.mxu1 %v237_v47 }
  0x30   : > { %608 = vmatpush.bf16.msrb.mxu0 %v888_v48 }
  0x34   : > { %609 = vmatpush.bf16.msrb.mxu0 %v887_v49 }
  0x38   : > { %610 = vmatpush.bf16.msrb.mxu0 %v886_v50 }
  0x3c   : > { %611 = vmatpush.bf16.msrb.mxu0 %v885_v51 }
  0x3f   : > { %850 = vmatmul.msk.bf16.vlgmr.msrb.gmra.mxu0 %vm540_vm1, %v240_v54 }
  0xa8   : > { %v557_v60 = vpop.f32.mrf.mxu0 }
  0xa9   : > { %v558_v61 = vadd.f32 %v901_v59, %v557_v60 }
  0xab   : > { %v571_v62 = vpop.f32.mrf.mxu1 }
  0xac   : > { %v572_v0 = vadd.f32 %v571_v62, %v558_v61 }
  0xaf   : > { %v585_v63 = vpop.f32.mrf.mxu2 }
  0xb0   : > { %v559_v1 = vpop.f32.mrf.mxu0  ;;  %v599_v3 = vpop.f32.mrf.mxu3  ;;  %v586_v4 = vadd.f32 %v585_v63, %v572_v0 }
  0xb1   : > { %v560_v7 = vadd.f32 %v901_v59, %v559_v1 }
  0xb2   : > { %v600_v9 = vadd.f32 %v599_v3, %v586_v4 }
  0xb3   : > { %v573_v8 = vpop.f32.mrf.mxu1 }
  0xb4   : > { %v574_v13 = vadd.f32 %v573_v8, %v560_v7 }
  0xb7   : > { %v587_v10 = vpop.f32.mrf.mxu2 }
  0xb8   : > { %v588_v16 = vadd.f32 %v587_v10, %v574_v13  ;;  %v601_v18 = vpop.f32.mrf.mxu3 }
  0xba   : > { %v602_v20 = vadd.f32 %v601_v18, %v588_v16 }
  0xbc   : > { %v613_v11 = vpop.f32.mrf.mxu0 }
  0xbd   : > { %v614_v14 = vadd.f32 %v613_v11, %v600_v9 }
  0xbf   : > { %v636_v17 = vadd.f32 %v631_v12, %v614_v14 }
  0xc1   : > { %638 = vst [vmem:[%s1089_s10 + $0x1] sm:$0xff] %v636_v17 }
  0xc4   : > { %v615_v21 = vpop.f32.mrf.mxu0 }
  0xc5   : > { %v616_v23 = vadd.f32 %v615_v21, %v602_v20 }
  0xc7   : > { %v637_v24 = vadd.f32 %v633_v22, %v616_v23 }
  0xc9   : > { %639 = vst [vmem:[%s1089_s10 + $0x9] sm:$0xff] %v637_v24 }
  0xca PF: > { %s15_s18 = sadd.s32 1, %s908_s18  }
  0xcb   : > { %p12_p4 = scmp.ge.s32.totalorder %s15_s18, 4  }
  0xcd   :  { %14 = sbr.rel (!%p12_p4) target bundleno = 1 (0x1), region = 70 }

// kernel: dinov2_forward.7
= control target key start
LH: loop header
LB: loop body
LE: loop exit
PB: predicated region body
PF: predicated region fallthrough
CT: control target
= control target key end

     0   :  { %vm18_vm0 = vcmask 1041408   ;;  %s143_s0 = inlined_call_operand.vmem [shape: f32[2,128], index: 0, kind: input, shape index: {}]   ;;  %s144_s1 = inlined_call_operand.vmem [shape: f32[1,128], index: 1, kind: input, shape index: {}]   ;;  %s145_s2 = inlined_call_operand.vmem [shape: f32[1,128], index: 2, kind: input, shape index: {}]   ;;  %s146_s3 = inlined_call_operand.hbm [shape: f32[2,128], index: 3, kind: output, shape index: {}]  }
   0x1   :  { %v15_v0 = vld [vmem:[%s143_s0] sm:$0x3] }
   0x2   :  { %8 = vsyncpa [#allocation3], 0  ;;  %v19_v1 = vsel %vm18_vm0, %v15_v0, 0.0  ;;  %v107_v2 = vmov 128.0   ;;  %v75_v23 = vld [vmem:[%s144_s1] ss:$0 sm:$0xff] }
   0x3   :  { %20 = vadd.xlane.f32.xlu0 %v19_v1  ;;  %77 = vrcp.f32 %v107_v2  ;;  %v76_v26 = vld [vmem:[%s145_s2] ss:$0 sm:$0xff]  ;;  %s108_s17 = smov [#allocation2]   ;;  %s64_s21 = sshll.u32 %s146_s3, 4  ;;  %s65_s21 = int_to_ptr.hbm [resolvable:$true] %s64_s21 }
   0x4   :  { %s62_s18 = sshll.u32 %s108_s17, 4  ;;  %s63_s18 = int_to_ptr.vmem [resolvable:$true] %s62_s18 }
   0x9   :  { %v78_v3 = vpop.eup %77 }
   0xa   :  { %v23_v4 = vmul.f32 128.0, %v78_v3  ;;  %vm27_vm1 = vweird.f32 %v78_v3 }
   0xc   :  { %v24_v5 = vsub.f32 1.0, %v23_v4 }
   0xe   :  { %v25_v6 = vmul.f32 %v78_v3, %v24_v5 }
  0x10   :  { %v26_v7 = vadd.f32 %v78_v3, %v25_v6 }
  0x12   :  { %v28_v8 = vsel %vm27_vm1, %v78_v3, %v26_v7 }
  0x76   :  { %v21_v9 = vpop.xlane.xlu0 %20 }
  0x77   :  { %v29_v10 = vmul.f32 %v28_v8, %v21_v9 }
  0x79   :  { %v30_v11 = vsub.f32 %v15_v0, %v29_v10 }
  0x7b   :  { %v31_v12 = vmul.f32 %v30_v11, %v30_v11 }
  0x7d   :  { %v32_v13 = vsel %vm18_vm0, %v31_v12, 0.0 }
  0x7e   :  { %33 = vadd.xlane.f32.xlu0 %v32_v13 }
  0xf1   :  { %v34_v14 = vpop.xlane.xlu0 %33 }
  0xf2   :  { %v35_v15 = vmul.f32 %v34_v14, %v28_v8 }
  0xf4   :  { %v36_v16 = vadd.f32 1e-06, %v35_v15 }
  0xf6   :  { %79 = vrsqrt.f32 %v36_v16  ;;  %vm43_vm3 = vweird.f32 %v36_v16 }
  0xfc   :  { %v80_v17 = vpop.eup %79 }
  0xfd   :  { %v38_v18 = vmul.f32 %v80_v17, %v36_v16  ;;  %vm44_vm2 = vweird.f32 %v80_v17 }
  0xfe   :  { %vm45_vm4 = vmor %vm43_vm3, %vm44_vm2 }
  0xff   :  { %v39_v19 = vmul.f32 %v80_v17, %v38_v18 }
 0x101   :  { %v40_v20 = vmul.f32 0.5, %v39_v19 }
 0x103   :  { %v41_v21 = vsub.f32 1.5, %v40_v20 }
 0x105   :  { %v42_v22 = vmul.f32 %v80_v17, %v41_v21 }
 0x107   :  { %v46_v24 = vsel %vm45_vm4, %v80_v17, %v42_v22 }
 0x108   :  { %v47_v25 = vmul.f32 %v46_v24, %v30_v11 }
 0x10a   :  { %v51_v27 = vmul.f32 %v75_v23, %v47_v25 }
 0x10c   :  { %v55_v28 = vadd.f32 %v76_v26, %v51_v27 }
 0x10e   :  { %56 = vst [vmem:[#allocation2] sm:$0x3] %v55_v28 }
 0x10f   :  { %67 = dma.vmem_to_hbm [thread:$0]  %s63_s18, 32, %s65_s21, [#allocation3]  }
 0x110   :  { %105 = dma.done.wait [#allocation3], 32  }
 0x111   :  { %106 = vsyncadd [#allocation3], 4294967264 }
 0x112   :  { %72 = vsyncpa [#allocation3], 1 }

// kernel: dinov2_forward.5
= control target key start
LH: loop header
LB: loop body
LE: loop exit
PB: predicated region body
PF: predicated region fallthrough
CT: control target
= control target key end

     0   :  { %s4080_s0 = inlined_call_operand.vmem [shape: f32[2,24,128], index: 0, kind: input, shape index: {}, may-alias: {0,19}]   ;;  %s4081_s1 = inlined_call_operand.vmem [shape: f32[1,128], index: 1, kind: input, shape index: {}]   ;;  %s4082_s2 = inlined_call_operand.vmem [shape: f32[1,128], index: 2, kind: input, shape index: {}]   ;;  %s4083_s3 = inlined_call_operand.vmem [shape: bf16[2,128,64], index: 3, kind: input, shape index: {}]   ;;  %s4084_s4 = inlined_call_operand.vmem [shape: f32[2,1,64], index: 4, kind: input, shape index: {}]   ;;  %s4085_s5 = inlined_call_operand.vmem [shape: bf16[2,128,64], index: 5, kind: input, shape index: {}]   ;;  %s4086_s6 = inlined_call_operand.vmem [shape: f32[2,1,64], index: 6, kind: input, shape index: {}]   ;;  %s4087_s7 = inlined_call_operand.vmem [shape: bf16[2,128,64], index: 7, kind: input, shape index: {}]   ;;  %s4088_s8 = inlined_call_operand.vmem [shape: f32[2,1,64], index: 8, kind: input, shape index: {}]   ;;  %s4089_s9 = inlined_call_operand.vmem [shape: bf16[2,64,128], index: 9, kind: input, shape index: {}]   ;;  %s4090_s10 = inlined_call_operand.vmem [shape: f32[1,128], index: 10, kind: input, shape index: {}]   ;;  %s4091_s11 = inlined_call_operand.vmem [shape: f32[1,128], index: 11, kind: input, shape index: {}]   ;;  %s4092_s12 = inlined_call_operand.vmem [shape: f32[1,128], index: 12, kind: input, shape index: {}]   ;;  %s4093_s13 = inlined_call_operand.vmem [shape: f32[1,128], index: 13, kind: input, shape index: {}]   ;;  %s4094_s14 = inlined_call_operand.vmem [shape: bf16[128,512], index: 14, kind: input, shape index: {}]   ;;  %s4095_s15 = inlined_call_operand.vmem [shape: f32[1,512], index: 15, kind: input, shape index: {}]   ;;  %s4096_s16 = inlined_call_operand.vmem [shape: bf16[512,128], index: 16, kind: input, shape index: {}]   ;;  %s4097_s17 = inlined_call_operand.vmem [shape: f32[1,128], index: 17, kind: input, shape index: {}]   ;;  %s4098_s18 = inlined_call_operand.vmem [shape: f32[1,128], index: 18, kind: input, shape index: {}]   ;;  %s4099_s19 = inlined_call_operand.vmem [shape: f32[2,24,128], index: 19, kind: output, shape index: {}, may-alias: {0,19}]  }
   0x1   :  { %4101 = sst [smem:[#allocation2_spill]] %s4080_s0  ;;  %s3303_s0 = smov 0  }
   0x2   :  { %4102 = sst [smem:[#allocation3_spill]] %s4081_s1 }
   0x3   :  { %4103 = sst [smem:[#allocation4_spill]] %s4082_s2 }
   0x4   :  { %4104 = sst [smem:[#allocation5_spill]] %s4083_s3 }
   0x5 LB: > { %s2428_s30 = sadd.s32 4294967295, %s3200_s0   ;;  %p2432_p0 = scmp.ge.s32.totalorder %s3200_s0, 1  ;;  %s3200_s0 = sphi %s3303_s0, %s29_s0  }
   0x6   : > { %p537_p1 = scmp.lt.s32.totalorder %s3200_s0, 3 }
   0x8   : > { %p538_p2 = pnand %p2432_p0, %p537_p1 }
   0x9   : > { %p593_p3 = scmp.lt.s32.totalorder (!%p538_p2), %s2428_s30, 1  ;;  %s4105_s22 = sld [smem:[#allocation2_spill]] (!%p538_p2) }
   0xa   : > { %541 = sbr.rel (%p538_p2) target bundleno = 2162 (0x872), region = 96  ;;  %s4106_s25 = sld [smem:[#allocation5_spill]] (!%p538_p2) }
   0xb   : > { %s4110_s21 = sld [smem:[#allocation4_spill]] (!%p538_p2) }
   0xf   : > { %s4112_s30 = smov (!%p593_p3, %s2428_s30), 1  ;;  %v3202_v3 = vmov 128.0   ;;  %v3003_v23 = vld [vmem:[%s4085_s5 + $0x38] sm:$0xff]  ;;  %v3002_v26 = vld [vmem:[%s4085_s5 + $0x30] sm:$0xff]  ;;  %v3001_v29 = vld [vmem:[%s4085_s5 + $0x28] sm:$0xff]  ;;  %vm955_vm10 = vcmask 523264  }
  0x10   : > { %s3108_s20 = smul.u32 24, %s4112_s30  ;;  %3132 = vrcp.f32 %v3202_v3  ;;  %v2995_v22 = vld [vmem:[%s4106_s25 + $0x38] sm:$0xff]  ;;  %847 = vmatpush.bf16.msra.mxu1 %v3003_v23  ;;  %v2994_v25 = vld [vmem:[%s4106_s25 + $0x30] sm:$0xff]  ;;  %v2993_v28 = vld [vmem:[%s4106_s25 + $0x28] sm:$0xff]  ;;  %vm1038_vm11 = vcmask 1043456   ;;  %vm994_vm13 = vcmask 195584  }
  0x11   : > { %v3011_v24 = vld [vmem:[%s4087_s7 + $0x38] sm:$0xff]  ;;  %761 = vmatpush.bf16.msra.mxu0 %v2995_v22  ;;  %v3010_v27 = vld [vmem:[%s4087_s7 + $0x30] sm:$0xff]  ;;  %v3009_v30 = vld [vmem:[%s4087_s7 + $0x28] sm:$0xff] }
  0x12   : > { %s597_s2 = scalar_lea.vmem %s4105_s22, %s3108_s20  ;;  %933 = vmatpush.bf16.msra.mxu2 %v3011_v24  ;;  %v2992_v31 = vld [vmem:[%s4106_s25 + $0x20] sm:$0xff]  ;;  %v2991_v34 = vld [vmem:[%s4106_s25 + $0x18] sm:$0xff]  ;;  %v2990_v37 = vld [vmem:[%s4106_s25 + $0x10] sm:$0xff]  ;;  %s4109_s22 = sld [smem:[#allocation3_spill]] }
  0x13   : > { %v3319_v0 = vld [vmem:[%s597_s2] sm:$0xff]  ;;  %v3321_v1 = vld [vmem:[%s597_s2 + $0x10] sm:$0xff]  ;;  %v3325_v2 = vld [vmem:[%s597_s2 + $0x8] sm:$0xff]  ;;  %s602_s1 = scalar_lea.vmem %s4099_s19, %s3108_s20 }
  0x14   : > { %609 = vadd.xlane.f32.xlu0 %v3319_v0  ;;  %613 = vadd.xlane.f32.xlu1 %v3321_v1  ;;  %v3000_v32 = vld [vmem:[%s4085_s5 + $0x20] sm:$0xff]  ;;  %v2999_v35 = vld [vmem:[%s4085_s5 + $0x18] sm:$0xff]  ;;  %v2998_v38 = vld [vmem:[%s4085_s5 + $0x10] sm:$0xff] }
  0x15   : > { %762 = vmatpush.bf16.msra.mxu0 %v2994_v25  ;;  %848 = vmatpush.bf16.msra.mxu1 %v3002_v26  ;;  %v3008_v33 = vld [vmem:[%s4087_s7 + $0x20] sm:$0xff]  ;;  %v3007_v36 = vld [vmem:[%s4087_s7 + $0x18] sm:$0xff]  ;;  %v3006_v39 = vld [vmem:[%s4087_s7 + $0x10] sm:$0xff] }
  0x16   : > { %v3133_v4 = vpop.eup %3132  ;;  %934 = vmatpush.bf16.msra.mxu2 %v3010_v27  ;;  %v2989_v40 = vld [vmem:[%s4106_s25 + $0x8] sm:$0xff]  ;;  %v2988_v45 = vld [vmem:[%s4106_s25] sm:$0xff]  ;;  %v3023_v49 = vld [vmem:[%s4106_s25 + $0x78] sm:$0xff] }
  0x17   : > { %v616_v5 = vmul.f32 128.0, %v3133_v4  ;;  %vm620_vm0 = vweird.f32 %v3133_v4  ;;  %v2997_v41 = vld [vmem:[%s4085_s5 + $0x8] sm:$0xff]  ;;  %v2996_v46 = vld [vmem:[%s4085_s5] sm:$0xff]  ;;  %v3031_v50 = vld [vmem:[%s4085_s5 + $0x78] sm:$0xff] }
  0x18   : > { %v3005_v42 = vld [vmem:[%s4087_s7 + $0x8] sm:$0xff]  ;;  %v3004_v47 = vld [vmem:[%s4087_s7] sm:$0xff]  ;;  %v3039_v51 = vld [vmem:[%s4087_s7 + $0x78] sm:$0xff] }
  0x19   : > { %v617_v6 = vsub.f32 1.0, %v616_v5  ;;  %763 = vmatpush.bf16.msra.mxu0 %v2993_v28  ;;  %849 = vmatpush.bf16.msra.mxu1 %v3001_v29  ;;  %v3022_v56 = vld [vmem:[%s4106_s25 + $0x70] sm:$0xff]  ;;  %v3021_v60 = vld [vmem:[%s4106_s25 + $0x68] sm:$0xff]  ;;  %v3035_v22 = vld [vmem:[%s4087_s7 + $0x58] sm:$0xff] }
  0x1a   : > { %935 = vmatpush.bf16.msra.mxu2 %v3009_v30  ;;  %v3030_v57 = vld [vmem:[%s4085_s5 + $0x70] sm:$0xff]  ;;  %v3029_v61 = vld [vmem:[%s4085_s5 + $0x68] sm:$0xff]  ;;  %v3118_v30 = vld [vmem:[%s4109_s22] ss:$0 sm:$0xff] }
  0x1b   : > { %v618_v7 = vmul.f32 %v3133_v4, %v617_v6  ;;  %v3038_v58 = vld [vmem:[%s4087_s7 + $0x70] sm:$0xff]  ;;  %v3037_v63 = vld [vmem:[%s4087_s7 + $0x68] sm:$0xff]  ;;  %v3020_v6 = vld [vmem:[%s4106_s25 + $0x60] sm:$0xff] }
  0x1c   : > { %611 = vadd.xlane.f32.xlu0 %v3325_v2  ;;  %v3018_v25 = vld [vmem:[%s4106_s25 + $0x50] sm:$0xff] }
  0x1d   : > { %v619_v8 = vadd.f32 %v3133_v4, %v618_v7  ;;  %764 = vmatpush.bf16.msra.mxu0 %v2992_v31  ;;  %850 = vmatpush.bf16.msra.mxu1 %v3000_v32  ;;  %v3028_v7 = vld [vmem:[%s4085_s5 + $0x60] sm:$0xff]  ;;  %v3026_v26 = vld [vmem:[%s4085_s5 + $0x50] sm:$0xff] }
  0x1e   : > { %936 = vmatpush.bf16.msra.mxu2 %v3008_v33  ;;  %v3034_v28 = vld [vmem:[%s4087_s7 + $0x50] sm:$0xff] }
  0x1f   : > { %v3328_v9 = vsel %vm620_vm0, %v3133_v4, %v619_v8 }
  0x21   : > { %765 = vmatpush.bf16.msra.mxu0 %v2991_v34  ;;  %851 = vmatpush.bf16.msra.mxu1 %v2999_v35  ;;  %v3017_v34 = vld [vmem:[%s4106_s25 + $0x48] sm:$0xff] }
  0x22   : > { %937 = vmatpush.bf16.msra.mxu2 %v3007_v36  ;;  %v3025_v35 = vld [vmem:[%s4085_s5 + $0x48] sm:$0xff] }
  0x25   : > { %766 = vmatpush.bf16.msra.mxu0 %v2990_v37  ;;  %852 = vmatpush.bf16.msra.mxu1 %v2998_v38  ;;  %v3119_v38 = vld [vmem:[%s4110_s21] ss:$0 sm:$0xff] }
  0x26   : > { %938 = vmatpush.bf16.msra.mxu2 %v3006_v39 }
  0x29   : > { %767 = vmatpush.bf16.msra.mxu0 %v2989_v40  ;;  %853 = vmatpush.bf16.msra.mxu1 %v2997_v41 }
  0x2a   : > { %939 = vmatpush.bf16.msra.mxu2 %v3005_v42 }
  0x2d   : > { %768 = vmatpush.bf16.msra.mxu0 %v2988_v45  ;;  %854 = vmatpush.bf16.msra.mxu1 %v2996_v46 }
  0x2e   : > { %940 = vmatpush.bf16.msra.mxu2 %v3004_v47 }
  0x31   : > { %1140 = vmatpush.bf16.msrb.mxu0 %v3023_v49  ;;  %1228 = vmatpush.bf16.msrb.mxu1 %v3031_v50 }
  0x32   : > { %1316 = vmatpush.bf16.msrb.mxu2 %v3039_v51 }
  0x35   : > { %1141 = vmatpush.bf16.msrb.mxu0 %v3022_v56  ;;  %1229 = vmatpush.bf16.msrb.mxu1 %v3030_v57 }
  0x36   : > { %1317 = vmatpush.bf16.msrb.mxu2 %v3038_v58 }
  0x39   : > { %1142 = vmatpush.bf16.msrb.mxu0 %v3021_v60  ;;  %1230 = vmatpush.bf16.msrb.mxu1 %v3029_v61 }
  0x3a   : > { %1318 = vmatpush.bf16.msrb.mxu2 %v3037_v63 }
  0x3d   : > { %1143 = vmatpush.bf16.msrb.mxu0 %v3020_v6  ;;  %1231 = vmatpush.bf16.msrb.mxu1 %v3028_v7  ;;  %v3122_v6 = vld [vmem:[%s4088_s8] ss:$0 sm:$0xff] }
  0x87   : > { %v610_v10 = vpop.xlane.xlu0 %609  ;;  %v614_v15 = vpop.xlane.xlu1 %613 }
  0x88   : > { %v622_v11 = vmul.f32 %v3328_v9, %v610_v10  ;;  %v624_v18 = vmul.f32 %v3328_v9, %v614_v15  ;;  %v3036_v10 = vld [vmem:[%s4087_s7 + $0x60] sm:$0xff] }
  0x89   : > { %1319 = vmatpush.bf16.msrb.mxu2 %v3036_v10 }
  0x8a   : > { %v3332_v12 = vsub.f32 %v3319_v0, %v622_v11  ;;  %v3344_v20 = vsub.f32 %v3321_v1, %v624_v18 }
  0x8c   : > { %v628_v13 = vmul.f32 %v3332_v12, %v3332_v12  ;;  %v630_v21 = vmul.f32 %v3344_v20, %v3344_v20 }
  0x8d   : > { %1320 = vmatpush.bf16.msrb.mxu2 %v3035_v22 }
  0x8e   : > { %631 = vadd.xlane.f32.xlu1 %v628_v13 }
  0x8f   : > { %v612_v14 = vpop.xlane.xlu0 %611 }
  0x90   : > { %v623_v16 = vmul.f32 %v3328_v9, %v612_v14 }
  0x91   : > { %1321 = vmatpush.bf16.msrb.mxu2 %v3034_v28 }
  0x92   : > { %v3338_v17 = vsub.f32 %v3325_v2, %v623_v16  ;;  %v3120_v16 = vld [vmem:[%s4084_s4] ss:$0 sm:$0xff] }
  0x94   : > { %v629_v19 = vmul.f32 %v3338_v17, %v3338_v17 }
  0x96   : > { %633 = vadd.xlane.f32.xlu2 %v629_v19  ;;  %v3019_v19 = vld [vmem:[%s4106_s25 + $0x58] sm:$0xff] }
  0x97   : > { %1144 = vmatpush.bf16.msrb.mxu0 %v3019_v19 }
  0x9b   : > { %1145 = vmatpush.bf16.msrb.mxu0 %v3018_v25 }
  0x9e   : > { %635 = vadd.xlane.f32.xlu2 %v630_v21  ;;  %v3027_v21 = vld [vmem:[%s4085_s5 + $0x58] sm:$0xff] }
  0x9f   : > { %1232 = vmatpush.bf16.msrb.mxu1 %v3027_v21  ;;  %1146 = vmatpush.bf16.msrb.mxu0 %v3017_v34 }
  0xa3   : > { %1233 = vmatpush.bf16.msrb.mxu1 %v3026_v26 }
  0xa7   : > { %1234 = vmatpush.bf16.msrb.mxu1 %v3025_v35 }
 0x101   : > { %v632_v43 = vpop.xlane.xlu1 %631 }
 0x102   : > { %v637_v44 = vmul.f32 %v632_v43, %v3328_v9  ;;  %v3016_v43 = vld [vmem:[%s4106_s25 + $0x40] sm:$0xff] }
 0x103   : > { %1147 = vmatpush.bf16.msrb.mxu0 %v3016_v43 }
 0x104   : > { %v640_v48 = vadd.f32 1e-06, %v637_v44  ;;  %v3024_v44 = vld [vmem:[%s4085_s5 + $0x40] sm:$0xff] }
 0x105   : > { %1235 = vmatpush.bf16.msrb.mxu1 %v3024_v44 }
 0x106   : > { %3134 = vrsqrt.f32 %v640_v48  ;;  %vm649_vm2 = vweird.f32 %v640_v48 }
 0x109   : > { %v634_v52 = vpop.xlane.xlu2 %633 }
 0x10a   : > { %v638_v53 = vmul.f32 %v634_v52, %v3328_v9 }
 0x10c   : > { %v3135_v54 = vpop.eup %3134  ;;  %v641_v55 = vadd.f32 1e-06, %v638_v53 }
 0x10d   : > { %v644_v59 = vmul.f32 %v3135_v54, %v640_v48  ;;  %vm650_vm1 = vweird.f32 %v3135_v54 }
 0x10e   : > { %3136 = vrsqrt.f32 %v641_v55  ;;  %vm3459_vm3 = vmor %vm649_vm2, %vm650_vm1  ;;  %vm659_vm5 = vweird.f32 %v641_v55 }
 0x10f   : > { %v645_v62 = vmul.f32 %v3135_v54, %v644_v59 }
 0x111   : > { %v646_v3 = vmul.f32 0.5, %v645_v62  ;;  %v636_v4 = vpop.xlane.xlu2 %635 }
 0x112   : > { %v639_v5 = vmul.f32 %v636_v4, %v3328_v9 }
 0x113   : > { %v647_v8 = vsub.f32 1.5, %v646_v3 }
 0x114   : > { %v3137_v11 = vpop.eup %3136  ;;  %v642_v13 = vadd.f32 1e-06, %v639_v5 }
 0x115   : > { %v648_v14 = vmul.f32 %v3135_v54, %v647_v8  ;;  %v654_v15 = vmul.f32 %v3137_v11, %v641_v55  ;;  %vm660_vm4 = vweird.f32 %v3137_v11 }
 0x116   : > { %3138 = vrsqrt.f32 %v642_v13  ;;  %vm661_vm6 = vmor %vm659_vm5, %vm660_vm4  ;;  %vm669_vm7 = vweird.f32 %v642_v13 }
 0x117   : > { %v655_v18 = vmul.f32 %v3137_v11, %v654_v15  ;;  %v652_v23 = vsel %vm3459_vm3, %v3135_v54, %v648_v14 }
 0x118   : > { %v673_v31 = vmul.f32 %v652_v23, %v3332_v12  ;;  %v3033_v12 = vld [vmem:[%s4087_s7 + $0x48] sm:$0xff] }
 0x119   : > { %v656_v24 = vmul.f32 0.5, %v655_v18  ;;  %1322 = vmatpush.bf16.msrb.mxu2 %v3033_v12  ;;  %v3124_v12 = vld [vmem:[%s4086_s6 + $0x1] ss:$0 sm:$0xff] }
 0x11a   : > { %v679_v39 = vmul.f32 %v3118_v30, %v673_v31 }
 0x11b   : > { %v657_v27 = vsub.f32 1.5, %v656_v24 }
 0x11c   : > { %v3139_v29 = vpop.eup %3138  ;;  %v685_v46 = vadd.f32 %v3119_v38, %v679_v39 }
 0x11d   : > { %v658_v32 = vmul.f32 %v3137_v11, %v657_v27  ;;  %v664_v33 = vmul.f32 %v3139_v29, %v642_v13  ;;  %vm670_vm8 = vweird.f32 %v3139_v29 }
 0x11e   : > { %vm671_vm9 = vmor %vm669_vm7, %vm670_vm8 }
 0x11f   : > { %v662_v36 = vsel %vm661_vm6, %v3137_v11, %v658_v32  ;;  %v665_v37 = vmul.f32 %v3139_v29, %v664_v33 }
 0x120   : > { %v674_v40 = vmul.f32 %v662_v36, %v3338_v17  ;;  %v3032_v17 = vld [vmem:[%s4087_s7 + $0x40] sm:$0xff] }
 0x121   : > { %v666_v41 = vmul.f32 0.5, %v665_v37  ;;  %1323 = vmatpush.bf16.msrb.mxu2 %v3032_v17  ;;  %v3125_v17 = vld [vmem:[%s4088_s8 + $0x1] ss:$0 sm:$0xff] }
 0x122   : > { %v680_v42 = vmul.f32 %v3118_v30, %v674_v40 }
 0x123   : > { %v667_v45 = vsub.f32 1.5, %v666_v41 }
 0x124   : > { %v686_v47 = vadd.f32 %v3119_v38, %v680_v42 }
 0x125   : > { %v668_v48 = vmul.f32 %v3139_v29, %v667_v45 }
 0x126   : > { %v688_v49 = vpack.c.bf16 %v686_v47, %v685_v46 }
 0x127   : > { %v672_v50 = vsel %vm671_vm9, %v3139_v29, %v668_v48 }
 0x128   : > { %769 = vmatmul.bf16.vlgmr.msra.gmra.mxu0 %v688_v49  ;;  %855 = vmatmul.bf16.vlgmr.msra.gmra.mxu1 %v688_v49  ;;  %v675_v51 = vmul.f32 %v672_v50, %v3344_v20  ;;  %v3121_v20 = vld [vmem:[%s4086_s6] ss:$0 sm:$0xff] }
 0x129   : > { %941 = vmatmul.bf16.vlgmr.msra.gmra.mxu2 %v688_v49 }
 0x12a   : > { %v681_v52 = vmul.f32 %v3118_v30, %v675_v51  ;;  %v3525_v30 = vld [vmem:[%s4084_s4 + $0x1] ss:$0 sm:$0xff] }
 0x12c   : > { %v687_v53 = vadd.f32 %v3119_v38, %v681_v52 }
 0x12e   : > { %v689_v54 = vpack.c.bf16 %v687_v53, %v687_v53 }
 0x138   : > { %774 = vmatmul.bf16.gmra.mxu0 %v689_v54  ;;  %860 = vmatmul.bf16.gmra.mxu1 %v689_v54 }
 0x139   : > { %946 = vmatmul.bf16.gmra.mxu2 %v689_v54 }
 0x148   : > { %1148 = vmatmul.bf16.vlgmr.msrb.gmra.mxu0 %v688_v49  ;;  %1236 = vmatmul.bf16.vlgmr.msrb.gmra.mxu1 %v688_v49 }
 0x149   : > { %1324 = vmatmul.bf16.vlgmr.msrb.gmra.mxu2 %v688_v49 }
 0x158   : > { %1153 = vmatmul.bf16.gmra.mxu0 %v689_v54  ;;  %1241 = vmatmul.bf16.gmra.mxu1 %v689_v54 }
 0x159   : > { %1329 = vmatmul.bf16.gmra.mxu2 %v689_v54 }
 0x1a5   : > { %v770_v55 = vpop.f32.mrf.mxu0  ;;  %v856_v56 = vpop.f32.mrf.mxu1 }
 0x1a6   : > { %v857_v7 = vadd.f32 %v3121_v20, %v856_v56  ;;  %v771_v27 = vadd.f32 %v3120_v16, %v770_v55 }
 0x1ac   : > { %v942_v57 = vpop.f32.mrf.mxu2 }
 0x1ad   : > { %v772_v58 = vpop.f32.mrf.mxu0  ;;  %v858_v59 = vpop.f32.mrf.mxu1  ;;  %v943_v22 = vadd.f32 %v3122_v6, %v942_v57 }
 0x1ae   : > { %v859_v4 = vadd.f32 %v3121_v20, %v858_v59  ;;  %v773_v23 = vadd.f32 %v3120_v16, %v772_v58  ;;  %v690_v59 = vlaneseq }
 0x1b0   : > { %v953_v14 = vpack.c.bf16 %v859_v4, %v857_v7  ;;  %v951_v29 = vpack.c.bf16 %v773_v23, %v771_v27 }
 0x1b2   : > { %v963_v19 = vsel %vm955_vm10, %v953_v14, 0 }
 0x1b4   : > { %v944_v60 = vpop.f32.mrf.mxu2 }
 0x1b5   : > { %v775_v61 = vpop.f32.mrf.mxu0  ;;  %v861_v62 = vpop.f32.mrf.mxu1  ;;  %v945_v18 = vadd.f32 %v3122_v6, %v944_v60 }
 0x1b6   : > { %v862_v63 = vadd.f32 %v3121_v20, %v861_v62  ;;  %v776_v37 = vadd.f32 %v3120_v16, %v775_v61  ;;  %v3548_v20 = vand.u32 127, %v690_v59 }
 0x1b7   : > { %v1030_v28 = vpack.c.bf16 %v945_v18, %v943_v22 }
 0x1b8   : > { %v954_v3 = vpack.c.bf16 %v862_v63, %v862_v63  ;;  %v952_v42 = vpack.c.bf16 %v776_v37, %v776_v37  ;;  %vm692_vm12 = vcmp.lt.s32.totalorder %v3548_v20, 17 }
 0x1ba   : > { %v966_v5 = vsel %vm955_vm10, %v954_v3, 0 }
 0x1bb   : > { %974 = vmatpush.bf16.xpose.msra.mxu3 %v966_v5 }
 0x1bc   : > { %v947_v8 = vpop.f32.mrf.mxu2 }
 0x1bd   : > { %v948_v10 = vadd.f32 %v3122_v6, %v947_v8  ;;  %v777_v11 = vpop.f32.mrf.mxu0  ;;  %v863_v13 = vpop.f32.mrf.mxu1 }
 0x1bf   : > { %v1031_v15 = vpack.c.bf16 %v948_v10, %v948_v10 }
 0x1c1   : > { %v1040_v21 = vsel %vm1038_vm11, %v1031_v15, 0 }
 0x1c3   : > { %975 = vmatpush.bf16.xpose.msra.mxu3 %v963_v19 }
 0x1c4   : > { %v949_v24 = vpop.f32.mrf.mxu2 }
 0x1c5   : > { %v1149_v25 = vpop.f32.mrf.mxu0  ;;  %v1237_v26 = vpop.f32.mrf.mxu1 }
 0x1c6   : > { %v3529_v34 = vadd.f32 %v3525_v30, %v1149_v25  ;;  %v1238_v46 = vadd.f32 %v3124_v12, %v1237_v26 }
 0x1ca   : > { %2531 = vmatmul.msk.bf16.vlgmr.msra.gmra.mxu3 %vm955_vm10, %v951_v29 }
 0x1cb   : > { %1048 = vmatpush.bf16.msrb.mxu3 %v1040_v21 }
 0x1cc   : > { %v1325_v31 = vpop.f32.mrf.mxu2 }
 0x1cd   : > { %v1151_v32 = vpop.f32.mrf.mxu0  ;;  %v1239_v33 = vpop.f32.mrf.mxu1  ;;  %v1326_v55 = vadd.f32 %v3125_v17, %v1325_v31 }
 0x1ce   : > { %v3532_v35 = vadd.f32 %v3525_v30, %v1151_v32  ;;  %v1240_v44 = vadd.f32 %v3124_v12, %v1239_v33 }
 0x1cf   : > { %1049 = vmatpush.bf16.msrb.mxu3 %v1030_v28 }
 0x1d0   : > { %v1334_v36 = vpack.c.bf16 %v3532_v35, %v3529_v34  ;;  %v1336_v51 = vpack.c.bf16 %v1240_v44, %v1238_v46  ;;  %v3012_v34 = vld [vmem:[%s4089_s9] sm:$0xff] }
 0x1d2   : > { %v1345_v56 = vsel %vm955_vm10, %v1336_v51, 0 }
 0x1d4   : > { %v1327_v38 = vpop.f32.mrf.mxu2 }
 0x1d5   : > { %v3539_v39 = vpop.f32.mrf.mxu0  ;;  %v1242_v40 = vpop.f32.mrf.mxu1  ;;  %v1328_v53 = vadd.f32 %v3125_v17, %v1327_v38 }
 0x1d6   : > { %v1243_v41 = vadd.f32 %v3124_v12, %v1242_v40  ;;  %v1155_v46 = vadd.f32 %v3525_v30, %v3539_v39 }
 0x1d7   : > { %v1409_v57 = vpack.c.bf16 %v1328_v53, %v1326_v55 }
 0x1d8   : > { %v1337_v43 = vpack.c.bf16 %v1243_v41, %v1243_v41 }
 0x1da   : > { %v1348_v45 = vsel %vm955_vm10, %v1337_v43, 0  ;;  %2532 = vmatmul.msk.bf16.gmra.mxu3 %vm955_vm10, %v952_v42 }
 0x1db   : > { %1356 = vmatpush.bf16.xpose.msra.mxu3 %v1348_v45 }
 0x1dc   : > { %v1330_v47 = vpop.f32.mrf.mxu2 }
 0x1dd   : > { %v1331_v48 = vadd.f32 %v3125_v17, %v1330_v47  ;;  %v1156_v49 = vpop.f32.mrf.mxu0  ;;  %v1244_v50 = vpop.f32.mrf.mxu1  ;;  %v3015_v17 = vld [vmem:[%s4089_s9 + $0x18] sm:$0xff]  ;;  %v1335_v47 = vpack.c.bf16 %v1155_v46, %v1155_v46 }
 0x1de   : > { %1531 = vmatpush.bf16.msra.mxu2 %v3015_v17  ;;  %v3013_v49 = vld [vmem:[%s4089_s9 + $0x8] sm:$0xff] }
 0x1df   : > { %v1410_v52 = vpack.c.bf16 %v1331_v48, %v1331_v48  ;;  %v3014_v48 = vld [vmem:[%s4089_s9 + $0x10] sm:$0xff] }
 0x1e1   : > { %v1418_v54 = vsel %vm1038_vm11, %v1410_v52, 0 }
 0x1e2   : > { %1426 = vmatpush.bf16.msra.mxu0 %v1418_v54  ;;  %1532 = vmatpush.bf16.msra.mxu2 %v3014_v48 }
 0x1e3   : > { %1357 = vmatpush.bf16.xpose.msra.mxu3 %v1345_v56 }
 0x1e4   : > { %v1332_v58 = vpop.f32.mrf.mxu2 }
 0x1e6   : > { %1427 = vmatpush.bf16.msra.mxu0 %v1409_v57  ;;  %1533 = vmatpush.bf16.msra.mxu2 %v3013_v49 }
 0x1ea   : > { %1534 = vmatpush.bf16.msra.mxu2 %v3012_v34  ;;  %v3126_v34 = vld [vmem:[%s4090_s10] ss:$0 sm:$0xff] }
 0x24d   : > { %v977_v60 = vpop.f32.mrf.mxu3 }
 0x24e   : > { %v986_v61 = vmul.f32 0.125, %v977_v60 }
 0x250   : > { %v991_v62 = vsel %vm692_vm12, %v986_v61, -1e+30 }
 0x251   : > { %v995_v63 = vsel %vm994_vm13, %v991_v62, -inf }
 0x252   : > { %996 = vmax.xlane.f32.xlu0 %v995_v63 }
 0x255   : > { %v979_v3 = vpop.f32.mrf.mxu3 }
 0x256   : > { %v987_v4 = vmul.f32 0.125, %v979_v3 }
 0x258   : > { %v992_v5 = vsel %vm692_vm12, %v987_v4, -1e+30 }
 0x259   : > { %v998_v6 = vsel %vm994_vm13, %v992_v5, -inf }
 0x25a   : > { %999 = vmax.xlane.f32.xlu1 %v998_v6 }
 0x25d   : > { %v982_v7 = vpop.f32.mrf.mxu3 }
 0x25e   : > { %v988_v8 = vmul.f32 0.125, %v982_v7 }
 0x260   : > { %v993_v10 = vsel %vm692_vm12, %v988_v8, -1e+30 }
 0x261   : > { %v1001_v11 = vsel %vm994_vm13, %v993_v10, -inf }
 0x262   : > { %1002 = vmax.xlane.f32.xlu2 %v1001_v11 }
 0x265   : > { %v984_v13 = vpop.f32.mrf.mxu3 }
 0x2c5   : > { %v997_v14 = vpop.xlane.xlu0 %996 }
 0x2c6   : > { %v1004_v15 = vsub.f32 %v991_v62, %v997_v14 }
 0x2c8   : > { %v1007_v16 = vmul.f32 1.442695, %v1004_v15 }
 0x2ca   : > { %3140 = vpow2.f32 %v1007_v16 }
 0x2cd   : > { %v1000_v18 = vpop.xlane.xlu1 %999 }
 0x2ce   : > { %v1005_v19 = vsub.f32 %v992_v5, %v1000_v18 }
 0x2d0   : > { %v3141_v21 = vpop.eup %3140  ;;  %v1009_v22 = vmul.f32 1.442695, %v1005_v19 }
 0x2d1   : > { %v1013_v23 = vsel %vm994_vm13, %v3141_v21, 0.0 }
 0x2d2   : > { %3142 = vpow2.f32 %v1009_v22  ;;  %1014 = vadd.xlane.f32.xlu0 %v1013_v23 }
 0x2d5   : > { %v1003_v24 = vpop.xlane.xlu2 %1002 }
 0x2d6   : > { %v1006_v25 = vsub.f32 %v993_v10, %v1003_v24 }
 0x2d8   : > { %v3143_v26 = vpop.eup %3142  ;;  %v1011_v27 = vmul.f32 1.442695, %v1006_v25 }
 0x2d9   : > { %v1016_v28 = vsel %vm994_vm13, %v3143_v26, 0.0 }
 0x2da   : > { %3144 = vpow2.f32 %v1011_v27  ;;  %1017 = vadd.xlane.f32.xlu1 %v1016_v28  ;;  %v3043_v27 = vld [vmem:[%s4089_s9 + $0x38] sm:$0xff]  ;;  %v3042_v28 = vld [vmem:[%s4089_s9 + $0x30] sm:$0xff] }
 0x2db   : > { %1483 = vmatpush.bf16.msra.mxu1 %v3043_v27  ;;  %v3070_v27 = vld [vmem:[%s4094_s14 + $0xcc] sm:$0xf0] }
 0x2df   : > { %1484 = vmatpush.bf16.msra.mxu1 %v3042_v28  ;;  %v3068_v28 = vld [vmem:[%s4094_s14 + $0xc4] sm:$0xf] }
 0x2e0   : > { %v3145_v29 = vpop.eup %3144 }
 0x2e1   : > { %v1019_v31 = vsel %vm994_vm13, %v3145_v29, 0.0 }
 0x2e2   : > { %1020 = vadd.xlane.f32.xlu2 %v1019_v31  ;;  %v3041_v31 = vld [vmem:[%s4089_s9 + $0x28] sm:$0xff] }
 0x2e3   : > { %1485 = vmatpush.bf16.msra.mxu1 %v3041_v31  ;;  %v2830_v31 = vld [vmem:[%s4094_s14 + $0xd0] sm:$0xf0] }
 0x345   : > { %v1015_v32 = vpop.xlane.xlu0 %1014 }
 0x346   : > { %3146 = vrcp.f32 %v1015_v32 }
 0x34c   : > { %v3147_v37 = vpop.eup %3146 }
 0x34d   : > { %v1018_v33 = vpop.xlane.xlu1 %1017  ;;  %v1025_v38 = vmul.f32 %v3147_v37, %v3141_v21 }
 0x34e   : > { %3148 = vrcp.f32 %v1018_v33 }
 0x354   : > { %v3149_v12 = vpop.eup %3148 }
 0x355   : > { %v1026_v40 = vmul.f32 %v3149_v12, %v3143_v26  ;;  %v1021_v41 = vpop.xlane.xlu2 %1020 }
 0x356   : > { %3150 = vrcp.f32 %v1021_v41 }
 0x357   : > { %v1028_v42 = vpack.c.bf16 %v1026_v40, %v1025_v38 }
 0x359   : > { %2533 = vmatmul.msk.bf16.vlgmr.msrb.gmra.mxu3 %vm994_vm13, %v1028_v42 }
 0x35c   : > { %v3151_v43 = vpop.eup %3150 }
 0x35d   : > { %v1027_v44 = vmul.f32 %v3151_v43, %v3145_v29 }
 0x35f   : > { %v1029_v45 = vpack.c.bf16 %v1027_v44, %v1027_v44  ;;  %v3040_v44 = vld [vmem:[%s4089_s9 + $0x20] sm:$0xff] }
 0x360   : > { %1486 = vmatpush.bf16.msra.mxu1 %v3040_v44  ;;  %v3064_v44 = vld [vmem:[%s4094_s14 + $0xa4] sm:$0xf] }
 0x369   : > { %2534 = vmatmul.msk.bf16.gmra.mxu3 %vm994_vm13, %v1029_v45 }
 0x379   : > { %2682 = vmatmul.msk.bf16.vlgmr.msra.gmra.mxu3 %vm955_vm10, %v1334_v36 }
 0x389   : > { %2683 = vmatmul.msk.bf16.gmra.mxu3 %vm955_vm10, %v1335_v47 }
 0x3dc   : > { %v1051_v35 = vpop.f32.mrf.mxu3 }
 0x3e4   : > { %v1053_v30 = vpop.f32.mrf.mxu3 }
 0x3e5   : > { %v1060_v36 = vpack.c.bf16 %v1053_v30, %v1051_v35 }
 0x3e7   : > { %2728 = vmatmul.msk.bf16.vlgmr.msra.gmra.mxu2 %vm955_vm10, %v1060_v36  ;;  %v3127_v36 = vld [vmem:[%s4091_s11] ss:$0 sm:$0xff] }
 0x3ec   : > { %v1056_v39 = vpop.f32.mrf.mxu3 }
 0x3ed   : > { %v1061_v51 = vpack.c.bf16 %v1056_v39, %v1056_v39 }
 0x3f4   : > { %v1058_v50 = vpop.f32.mrf.mxu3 }
 0x3f7   : > { %2729 = vmatmul.msk.bf16.gmra.mxu2 %vm955_vm10, %v1061_v51 }
 0x3fc   : > { %v1359_v52 = vpop.f32.mrf.mxu3 }
 0x3fd   : > { %v1368_v53 = vmul.f32 0.125, %v1359_v52 }
 0x3ff   : > { %v1371_v54 = vsel %vm692_vm12, %v1368_v53, -1e+30 }
 0x400   : > { %v1374_v55 = vsel %vm994_vm13, %v1371_v54, -inf }
 0x401   : > { %1375 = vmax.xlane.f32.xlu0 %v1374_v55 }
 0x404   : > { %v1361_v56 = vpop.f32.mrf.mxu3 }
 0x405   : > { %v1369_v57 = vmul.f32 0.125, %v1361_v56 }
 0x407   : > { %v1372_v58 = vsel %vm692_vm12, %v1369_v57, -1e+30 }
 0x408   : > { %v1377_v59 = vsel %vm994_vm13, %v1372_v58, -inf }
 0x409   : > { %1378 = vmax.xlane.f32.xlu1 %v1377_v59 }
 0x40c   : > { %v1364_v60 = vpop.f32.mrf.mxu3 }
 0x40d   : > { %v1370_v61 = vmul.f32 0.125, %v1364_v60 }
 0x40f   : > { %v1373_v62 = vsel %vm692_vm12, %v1370_v61, -1e+30 }
 0x410   : > { %v1380_v63 = vsel %vm994_vm13, %v1373_v62, -inf }
 0x411   : > { %1381 = vmax.xlane.f32.xlu2 %v1380_v63 }
 0x414   : > { %v1366_v3 = vpop.f32.mrf.mxu3 }
 0x46a   : > { %v1536_v4 = vpop.f32.mrf.mxu2 }
 0x472   : > { %v3595_v5 = vpop.f32.mrf.mxu2 }
 0x474   : > { %v1376_v6 = vpop.xlane.xlu0 %1375 }
 0x475   : > { %v1383_v7 = vsub.f32 %v1371_v54, %v1376_v6 }
 0x477   : > { %v1386_v8 = vmul.f32 1.442695, %v1383_v7 }
 0x479   : > { %3152 = vpow2.f32 %v1386_v8 }
 0x47a   : > { %v3597_v10 = vpop.f32.mrf.mxu2 }
 0x47c   : > { %v1379_v11 = vpop.xlane.xlu1 %1378 }
 0x47d   : > { %v1384_v13 = vsub.f32 %v1372_v58, %v1379_v11 }
 0x47f   : > { %v3153_v14 = vpop.eup %3152  ;;  %v1388_v15 = vmul.f32 1.442695, %v1384_v13  ;;  %v2844_v13 = vld [vmem:[%s4094_s14 + $0xe0] sm:$0xf] }
 0x480   : > { %v1392_v20 = vsel %vm994_vm13, %v3153_v14, 0.0 }
 0x481   : > { %3154 = vpow2.f32 %v1388_v15  ;;  %1393 = vadd.xlane.f32.xlu0 %v1392_v20  ;;  %v3072_v15 = vld [vmem:[%s4094_s14 + $0xe4] sm:$0xf] }
 0x482   : > { %v1543_v16 = vpop.f32.mrf.mxu2 }
 0x483   : > { %v2846_v16 = vld [vmem:[%s4094_s14 + $0xf0] sm:$0xf0] }
 0x484   : > { %v1382_v18 = vpop.xlane.xlu2 %1381 }
 0x485   : > { %v1385_v19 = vsub.f32 %v1373_v62, %v1382_v18  ;;  %v2852_v18 = vld [vmem:[%s4094_s14 + $0xe8] sm:$0xf] }
 0x487   : > { %v3155_v21 = vpop.eup %3154  ;;  %v1390_v22 = vmul.f32 1.442695, %v1385_v19  ;;  %v3075_v19 = vld [vmem:[%s4094_s14 + $0xf4] sm:$0xf0] }
 0x488   : > { %v1395_v23 = vsel %vm994_vm13, %v3155_v21, 0.0 }
 0x489   : > { %3156 = vpow2.f32 %v1390_v22  ;;  %1396 = vadd.xlane.f32.xlu1 %v1395_v23  ;;  %v2853_v22 = vor.u32 %v3075_v19, %v2852_v18  ;;  %v3073_v23 = vld [vmem:[%s4094_s14 + $0xec] sm:$0xf]  ;;  %v3052_v18 = vld [vmem:[%s4094_s14 + $0x44] sm:$0xf] }
 0x48b   : > { %1876 = vmatpush.bf16.msrb.mxu1 %v2853_v22  ;;  %v2772_v22 = vld [vmem:[%s4094_s14 + $0x48] sm:$0xf] }
 0x48f   : > { %v3157_v24 = vpop.eup %3156 }
 0x490   : > { %v1398_v25 = vsel %vm994_vm13, %v3157_v24, 0.0 }
 0x491   : > { %1399 = vadd.xlane.f32.xlu2 %v1398_v25 }
 0x4f4   : > { %v1394_v26 = vpop.xlane.xlu0 %1393 }
 0x4f5   : > { %3158 = vrcp.f32 %v1394_v26  ;;  %v2828_v26 = vld [vmem:[%s4094_s14 + $0xc0] sm:$0xf] }
 0x4fb   : > { %v3159_v32 = vpop.eup %3158 }
 0x4fc   : > { %v1397_v29 = vpop.xlane.xlu1 %1396  ;;  %v1404_v37 = vmul.f32 %v3159_v32, %v3153_v14  ;;  %v3074_v14 = vld [vmem:[%s4094_s14 + $0xec] sm:$0xf0]  ;;  %v2836_v32 = vld [vmem:[%s4094_s14 + $0xc8] sm:$0xf] }
 0x4fd   : > { %3160 = vrcp.f32 %v1397_v29  ;;  %v2845_v20 = vor.u32 %v3074_v14, %v2844_v13  ;;  %v2829_v29 = vor.u32 %v3070_v27, %v2828_v26  ;;  %v3057_v13 = vld [vmem:[%s4094_s14 + $0x6c] sm:$0xf]  ;;  %v2790_v14 = vld [vmem:[%s4094_s14 + $0x78] sm:$0xf0] }
 0x4fe   : > { %v3053_v26 = vld [vmem:[%s4094_s14 + $0x4c] sm:$0xf]  ;;  %v2774_v27 = vld [vmem:[%s4094_s14 + $0x58] sm:$0xf0] }
 0x4ff   : > { %1840 = vmatpush.bf16.msrb.mxu3 %v2845_v20  ;;  %v2764_v20 = vld [vmem:[%s4094_s14 + $0x40] sm:$0xf] }
 0x503   : > { %v3161_v33 = vpop.eup %3160  ;;  %1841 = vmatpush.bf16.msrb.mxu3 %v2829_v29  ;;  %v2748_v29 = vld [vmem:[%s4094_s14 + $0x20] sm:$0xf] }
 0x504   : > { %v1405_v12 = vmul.f32 %v3161_v33, %v3155_v21  ;;  %v1400_v40 = vpop.xlane.xlu2 %1399  ;;  %v2849_v21 = vor.u32 %v3072_v15, %v2846_v16  ;;  %v3071_v33 = vld [vmem:[%s4094_s14 + $0xd4] sm:$0xf0]  ;;  %v2793_v15 = vor.u32 %v3057_v13, %v2790_v14  ;;  %v3054_v16 = vld [vmem:[%s4094_s14 + $0x4c] sm:$0xf0] }
 0x505   : > { %3162 = vrcp.f32 %v1400_v40  ;;  %v2838_v40 = vld [vmem:[%s4094_s14 + $0xd8] sm:$0xf0]  ;;  %v2765_v19 = vor.u32 %v3054_v16, %v2764_v20 }
 0x506   : > { %v1407_v38 = vpack.c.bf16 %v1405_v12, %v1404_v37  ;;  %1858 = vmatpush.bf16.msrb.mxu0 %v2849_v21  ;;  %v2833_v37 = vor.u32 %v3068_v28, %v2830_v31  ;;  %v2837_v12 = vor.u32 %v3071_v33, %v2836_v32  ;;  %v2766_v21 = vld [vmem:[%s4094_s14 + $0x50] sm:$0xf0]  ;;  %v2777_v28 = vor.u32 %v3053_v26, %v2774_v27  ;;  %v3050_v31 = vld [vmem:[%s4094_s14 + $0x2c] sm:$0xf0]  ;;  %v3048_v32 = vld [vmem:[%s4094_s14 + $0x24] sm:$0xf] }
 0x507   : > { %v2749_v33 = vor.u32 %v3050_v31, %v2748_v29 }
 0x508   : > { %2684 = vmatmul.msk.bf16.vlgmr.msra.gmra.mxu0 %vm994_vm13, %v1407_v38  ;;  %v3069_v38 = vld [vmem:[%s4094_s14 + $0xcc] sm:$0xf]  ;;  %1877 = vmatpush.bf16.msrb.mxu1 %v2837_v12  ;;  %v2756_v12 = vld [vmem:[%s4094_s14 + $0x28] sm:$0xf] }
 0x50a   : > { %1859 = vmatpush.bf16.msrb.mxu0 %v2833_v37  ;;  %v2750_v37 = vld [vmem:[%s4094_s14 + $0x30] sm:$0xf0] }
 0x50b   : > { %v3163_v41 = vpop.eup %3162 }
 0x50c   : > { %v1406_v42 = vmul.f32 %v3163_v41, %v3157_v24  ;;  %v2854_v24 = vld [vmem:[%s4094_s14 + $0xf8] sm:$0xf0]  ;;  %v2841_v41 = vor.u32 %v3069_v38, %v2838_v40  ;;  %v3051_v38 = vld [vmem:[%s4094_s14 + $0x34] sm:$0xf0] }
 0x50d   : > { %v2857_v25 = vor.u32 %v3073_v23, %v2854_v24  ;;  %v3055_v23 = vld [vmem:[%s4094_s14 + $0x54] sm:$0xf0]  ;;  %v2769_v24 = vor.u32 %v3052_v18, %v2766_v21 }
 0x50e   : > { %v1408_v43 = vpack.c.bf16 %v1406_v42, %v1406_v42  ;;  %v2812_v42 = vld [vmem:[%s4094_s14 + $0xa0] sm:$0xf] }
 0x50f   : > { %1894 = vmatpush.bf16.msrb.mxu2 %v2857_v25  ;;  %v2773_v25 = vor.u32 %v3055_v23, %v2772_v22 }
 0x513   : > { %1895 = vmatpush.bf16.msrb.mxu2 %v2841_v41  ;;  %v2753_v41 = vor.u32 %v3048_v32, %v2750_v37 }
 0x518   : > { %2685 = vmatmul.msk.bf16.gmra.mxu0 %vm994_vm13, %v1408_v43  ;;  %v3066_v43 = vld [vmem:[%s4094_s14 + $0xac] sm:$0xf0] }
 0x585   : > { %v1429_v45 = vpop.f32.mrf.mxu0 }
 0x58d   : > { %v1431_v17 = vpop.f32.mrf.mxu0 }
 0x58e   : > { %v1438_v46 = vpack.c.bf16 %v1431_v17, %v1429_v45  ;;  %v2813_v45 = vor.u32 %v3066_v43, %v2812_v42  ;;  %v2814_v17 = vld [vmem:[%s4094_s14 + $0xb0] sm:$0xf0]  ;;  %v2757_v42 = vor.u32 %v3051_v38, %v2756_v12  ;;  %v3049_v43 = vld [vmem:[%s4094_s14 + $0x2c] sm:$0xf] }
 0x590   : > { %2710 = vmatmul.msk.bf16.vlgmr.msra.gmra.mxu1 %vm955_vm10, %v1438_v46  ;;  %v2820_v46 = vld [vmem:[%s4094_s14 + $0xa8] sm:$0xf]  ;;  %1842 = vmatpush.bf16.msrb.mxu3 %v2813_v45 }
 0x595   : > { %v1434_v47 = vpop.f32.mrf.mxu0 }
 0x596   : > { %v1439_v49 = vpack.c.bf16 %v1434_v47, %v1434_v47  ;;  %v3067_v47 = vld [vmem:[%s4094_s14 + $0xb4] sm:$0xf0] }
 0x59d   : > { %v1436_v48 = vpop.f32.mrf.mxu0 }
 0x59e   : > { %v2817_v48 = vor.u32 %v3064_v44, %v2814_v17  ;;  %v2758_v44 = vld [vmem:[%s4094_s14 + $0x38] sm:$0xf0] }
 0x59f   : > { %v2761_v17 = vor.u32 %v3049_v43, %v2758_v44  ;;  %v3083_v43 = vld [vmem:[%s4096_s16 + $0x38] sm:$0xff] }
 0x5a0   : > { %2711 = vmatmul.msk.bf16.gmra.mxu1 %vm955_vm10, %v1439_v49  ;;  %v2821_v49 = vor.u32 %v3067_v47, %v2820_v46  ;;  %1860 = vmatpush.bf16.msrb.mxu0 %v2817_v48  ;;  %v2732_v46 = vld [vmem:[%s4094_s14] sm:$0xf]  ;;  %v3046_v47 = vld [vmem:[%s4094_s14 + $0xc] sm:$0xf0]  ;;  %v3044_v48 = vld [vmem:[%s4094_s14 + $0x4] sm:$0xf] }
 0x5a1   : > { %v3107_v44 = vld [vmem:[%s4096_s16 + $0xf8] sm:$0xff] }
 0x5a2   : > { %1878 = vmatpush.bf16.msrb.mxu1 %v2821_v49 }
 0x60d   : > { %v1488_v35 = vpop.f32.mrf.mxu1 }
 0x60e   : > { %v1537_v30 = vadd.f32 %v1536_v4, %v1488_v35  ;;  %v2822_v35 = vld [vmem:[%s4094_s14 + $0xb8] sm:$0xf0] }
 0x610   : > { %v1550_v39 = vadd.f32 %v3126_v34, %v1537_v30 }
 0x612   : > { %v1556_v50 = vmul.f32 %v3127_v36, %v1550_v39  ;;  %v3062_v39 = vld [vmem:[%s4094_s14 + $0x8c] sm:$0xf0] }
 0x614   : > { %v3625_v51 = vadd.f32 %v1556_v50, %v3319_v0  ;;  %v3060_v50 = vld [vmem:[%s4094_s14 + $0x84] sm:$0xf] }
 0x615   : > { %v1490_v52 = vpop.f32.mrf.mxu1 }
 0x616   : > { %v1539_v53 = vadd.f32 %v3595_v5, %v1490_v52  ;;  %1564 = vadd.xlane.f32.xlu0 %v3625_v51 }
 0x618   : > { %v1551_v54 = vadd.f32 %v3126_v34, %v1539_v53  ;;  %v2798_v53 = vld [vmem:[%s4094_s14 + $0x90] sm:$0xf0] }
 0x61a   : > { %v1557_v55 = vmul.f32 %v3127_v36, %v1551_v54  ;;  %v2804_v54 = vld [vmem:[%s4094_s14 + $0x88] sm:$0xf] }
 0x61c   : > { %v3630_v56 = vadd.f32 %v1557_v55, %v3325_v2  ;;  %v3063_v55 = vld [vmem:[%s4094_s14 + $0x94] sm:$0xf0] }
 0x61d   : > { %v1493_v57 = vpop.f32.mrf.mxu1 }
 0x61e   : > { %v1542_v58 = vadd.f32 %v3597_v10, %v1493_v57  ;;  %1566 = vadd.xlane.f32.xlu1 %v3630_v56  ;;  %v2801_v57 = vor.u32 %v3060_v50, %v2798_v53  ;;  %v3045_v50 = vld [vmem:[%s4094_s14 + $0xc] sm:$0xf] }
 0x620   : > { %v1552_v59 = vadd.f32 %v3126_v34, %v1542_v58  ;;  %v3065_v34 = vld [vmem:[%s4094_s14 + $0xac] sm:$0xf]  ;;  %v2805_v58 = vor.u32 %v3063_v55, %v2804_v54  ;;  %1861 = vmatpush.bf16.msrb.mxu0 %v2801_v57 }
 0x621   : > { %v2825_v30 = vor.u32 %v3065_v34, %v2822_v35  ;;  %v2733_v34 = vor.u32 %v3046_v47, %v2732_v46  ;;  %v2734_v35 = vld [vmem:[%s4094_s14 + $0x10] sm:$0xf0] }
 0x622   : > { %v1558_v60 = vmul.f32 %v3127_v36, %v1552_v59  ;;  %v2796_v36 = vld [vmem:[%s4094_s14 + $0x80] sm:$0xf]  ;;  %v3061_v59 = vld [vmem:[%s4094_s14 + $0x8c] sm:$0xf]  ;;  %1879 = vmatpush.bf16.msrb.mxu1 %v2805_v58  ;;  %v3082_v46 = vld [vmem:[%s4096_s16 + $0x30] sm:$0xff] }
 0x623   : > { %1896 = vmatpush.bf16.msrb.mxu2 %v2825_v30  ;;  %v2797_v52 = vor.u32 %v3062_v39, %v2796_v36  ;;  %v2740_v30 = vld [vmem:[%s4094_s14 + $0x8] sm:$0xf]  ;;  %v2737_v36 = vor.u32 %v3044_v48, %v2734_v35  ;;  %v3047_v39 = vld [vmem:[%s4094_s14 + $0x14] sm:$0xf0]  ;;  %v3106_v47 = vld [vmem:[%s4096_s16 + $0xf0] sm:$0xff] }
 0x624   : > { %v3635_v0 = vadd.f32 %v1558_v60, %v3321_v1  ;;  %v2806_v60 = vld [vmem:[%s4094_s14 + $0x98] sm:$0xf0]  ;;  %v2741_v53 = vor.u32 %v3047_v39, %v2740_v30  ;;  %v3088_v48 = vld [vmem:[%s4096_s16 + $0x60] sm:$0xff]  ;;  %v3105_v35 = vld [vmem:[%s4096_s16 + $0xe8] sm:$0xff] }
 0x625   : > { %v1495_v61 = vpop.f32.mrf.mxu1  ;;  %1843 = vmatpush.bf16.msrb.mxu3 %v2797_v52  ;;  %v2742_v52 = vld [vmem:[%s4094_s14 + $0x18] sm:$0xf0]  ;;  %v3080_v39 = vld [vmem:[%s4096_s16 + $0x20] sm:$0xff] }
 0x626   : > { %1568 = vadd.xlane.f32.xlu2 %v3635_v0  ;;  %v2809_v61 = vor.u32 %v3061_v59, %v2806_v60  ;;  %v2745_v54 = vor.u32 %v3045_v50, %v2742_v52  ;;  %v3087_v30 = vld [vmem:[%s4096_s16 + $0x58] sm:$0xff]  ;;  %v3104_v50 = vld [vmem:[%s4096_s16 + $0xe0] sm:$0xff] }
 0x627   : > { %v1670_v52 = vld [vmem:[%s4095_s15] sm:$0xf] }
 0x628   : > { %1897 = vmatpush.bf16.msrb.mxu2 %v2809_v61 }
 0x62c   : > { %1898 = vmatpush.bf16.msrb.mxu2 %v2793_v15 }
 0x630   : > { %1899 = vmatpush.bf16.msrb.mxu2 %v2777_v28 }
 0x634   : > { %1900 = vmatpush.bf16.msrb.mxu2 %v2761_v17  ;;  %v3097_v17 = vld [vmem:[%s4096_s16 + $0xa8] sm:$0xff] }
 0x638   : > { %1901 = vmatpush.bf16.msrb.mxu2 %v2745_v54  ;;  %v3094_v54 = vld [vmem:[%s4096_s16 + $0x90] sm:$0xff] }
 0x63c   : > { %2342 = vmatpush.bf16.msra.mxu2 %v3107_v44 }
 0x640   : > { %2343 = vmatpush.bf16.msra.mxu2 %v3106_v47 }
 0x644   : > { %2344 = vmatpush.bf16.msra.mxu2 %v3105_v35 }
 0x648   : > { %2345 = vmatpush.bf16.msra.mxu2 %v3104_v50 }
 0x689   : > { %v1565_v62 = vpop.xlane.xlu0 %1564 }
 0x68a   : > { %v1570_v63 = vmul.f32 %v1565_v62, %v3328_v9  ;;  %v2780_v62 = vld [vmem:[%s4094_s14 + $0x60] sm:$0xf] }
 0x68c   : > { %v3640_v3 = vsub.f32 %v3625_v51, %v1570_v63  ;;  %v3058_v63 = vld [vmem:[%s4094_s14 + $0x6c] sm:$0xf0] }
 0x68e   : > { %v1576_v2 = vmul.f32 %v3640_v3, %v3640_v3 }
 0x690   : > { %1579 = vadd.xlane.f32.xlu0 %v1576_v2  ;;  %v3056_v2 = vld [vmem:[%s4094_s14 + $0x64] sm:$0xf] }
 0x691   : > { %v1567_v4 = vpop.xlane.xlu1 %1566 }
 0x692   : > { %v1571_v5 = vmul.f32 %v1567_v4, %v3328_v9  ;;  %v2781_v4 = vor.u32 %v3058_v63, %v2780_v62 }
 0x694   : > { %v3646_v6 = vsub.f32 %v3630_v56, %v1571_v5  ;;  %v2782_v5 = vld [vmem:[%s4094_s14 + $0x70] sm:$0xf0]  ;;  %1844 = vmatpush.bf16.msrb.mxu3 %v2781_v4 }
 0x696   : > { %v1577_v1 = vmul.f32 %v3646_v6, %v3646_v6 }
 0x698   : > { %1581 = vadd.xlane.f32.xlu1 %v1577_v1  ;;  %v2788_v1 = vld [vmem:[%s4094_s14 + $0x68] sm:$0xf]  ;;  %1845 = vmatpush.bf16.msrb.mxu3 %v2765_v19 }
 0x699   : > { %v1569_v7 = vpop.xlane.xlu2 %1568 }
 0x69a   : > { %v1572_v8 = vmul.f32 %v1569_v7, %v3328_v9  ;;  %v3059_v7 = vld [vmem:[%s4094_s14 + $0x74] sm:$0xf0] }
 0x69c   : > { %v3652_v10 = vsub.f32 %v3635_v0, %v1572_v8  ;;  %v2785_v8 = vor.u32 %v3056_v2, %v2782_v5  ;;  %1846 = vmatpush.bf16.msrb.mxu3 %v2749_v33 }
 0x69e   : > { %v1578_v11 = vmul.f32 %v3652_v10, %v3652_v10  ;;  %1862 = vmatpush.bf16.msrb.mxu0 %v2785_v8 }
 0x6a0   : > { %1583 = vadd.xlane.f32.xlu2 %v1578_v11  ;;  %v2789_v11 = vor.u32 %v3059_v7, %v2788_v1  ;;  %1847 = vmatpush.bf16.msrb.mxu3 %v2733_v34  ;;  %v3081_v34 = vld [vmem:[%s4096_s16 + $0x28] sm:$0xff] }
 0x6a2   : > { %1880 = vmatpush.bf16.msrb.mxu1 %v2789_v11  ;;  %1863 = vmatpush.bf16.msrb.mxu0 %v2769_v24 }
 0x6a4   : > { %2288 = vmatpush.bf16.msra.mxu3 %v3083_v43 }
 0x6a6   : > { %1881 = vmatpush.bf16.msrb.mxu1 %v2773_v25  ;;  %1864 = vmatpush.bf16.msrb.mxu0 %v2753_v41  ;;  %v3129_v25 = vld [vmem:[%s4093_s13] ss:$0 sm:$0xff]  ;;  %v3099_v41 = vld [vmem:[%s4096_s16 + $0xb8] sm:$0xff] }
 0x6a8   : > { %2289 = vmatpush.bf16.msra.mxu3 %v3082_v46 }
 0x6aa   : > { %1882 = vmatpush.bf16.msrb.mxu1 %v2757_v42  ;;  %1865 = vmatpush.bf16.msrb.mxu0 %v2737_v36  ;;  %v3098_v42 = vld [vmem:[%s4096_s16 + $0xb0] sm:$0xff]  ;;  %v3095_v36 = vld [vmem:[%s4096_s16 + $0x98] sm:$0xff] }
 0x6ac   : > { %2290 = vmatpush.bf16.msra.mxu3 %v3081_v34 }
 0x6ae   : > { %1883 = vmatpush.bf16.msrb.mxu1 %v2741_v53  ;;  %v3086_v53 = vld [vmem:[%s4096_s16 + $0x50] sm:$0xff] }
 0x6b0   : > { %2291 = vmatpush.bf16.msra.mxu3 %v3080_v39 }
 0x6b2   : > { %2324 = vmatpush.bf16.msra.mxu1 %v3099_v41 }
 0x6b6   : > { %2325 = vmatpush.bf16.msra.mxu1 %v3098_v42 }
 0x6ba   : > { %2326 = vmatpush.bf16.msra.mxu1 %v3097_v17 }
 0x703   : > { %v1580_v40 = vpop.xlane.xlu0 %1579 }
 0x704   : > { %v1585_v45 = vmul.f32 %v1580_v40, %v3328_v9  ;;  %v3091_v40 = vld [vmem:[%s4096_s16 + $0x78] sm:$0xff] }
 0x705   : > { %2306 = vmatpush.bf16.msra.mxu0 %v3091_v40 }
 0x706   : > { %v1588_v49 = vadd.f32 1e-06, %v1585_v45  ;;  %v3089_v45 = vld [vmem:[%s4096_s16 + $0x68] sm:$0xff] }
 0x708   : > { %3164 = vrsqrt.f32 %v1588_v49  ;;  %vm1597_vm15 = vweird.f32 %v1588_v49 }
 0x70b   : > { %v1582_v55 = vpop.xlane.xlu1 %1581 }
 0x70c   : > { %v1586_v57 = vmul.f32 %v1582_v55, %v3328_v9  ;;  %v3079_v55 = vld [vmem:[%s4096_s16 + $0x18] sm:$0xff] }
 0x70d   : > { %2292 = vmatpush.bf16.msra.mxu3 %v3079_v55 }
 0x70e   : > { %v3165_v58 = vpop.eup %3164  ;;  %v1589_v59 = vadd.f32 1e-06, %v1586_v57  ;;  %v3103_v57 = vld [vmem:[%s4096_s16 + $0xd8] sm:$0xff] }
 0x70f   : > { %v1592_v60 = vmul.f32 %v3165_v58, %v1588_v49  ;;  %vm1598_vm14 = vweird.f32 %v3165_v58  ;;  %v3096_v49 = vld [vmem:[%s4096_s16 + $0xa0] sm:$0xff]  ;;  %2346 = vmatpush.bf16.msra.mxu2 %v3103_v57 }
 0x710   : > { %3166 = vrsqrt.f32 %v1589_v59  ;;  %vm1599_vm0 = vmor %vm1597_vm15, %vm1598_vm14  ;;  %vm1607_vm2 = vweird.f32 %v1589_v59  ;;  %2327 = vmatpush.bf16.msra.mxu1 %v3096_v49 }
 0x711   : > { %v1593_v61 = vmul.f32 %v3165_v58, %v1592_v60  ;;  %v3085_v60 = vld [vmem:[%s4096_s16 + $0x48] sm:$0xff] }
 0x713   : > { %v1594_v62 = vmul.f32 0.5, %v1593_v61  ;;  %v1584_v63 = vpop.xlane.xlu2 %1583  ;;  %v3093_v61 = vld [vmem:[%s4096_s16 + $0x88] sm:$0xff] }
 0x714   : > { %v1587_v2 = vmul.f32 %v1584_v63, %v3328_v9  ;;  %v3128_v9 = vld [vmem:[%s4092_s12] ss:$0 sm:$0xff]  ;;  %2328 = vmatpush.bf16.msra.mxu1 %v3095_v36  ;;  %v3078_v63 = vld [vmem:[%s4096_s16 + $0x10] sm:$0xff] }
 0x715   : > { %v1595_v4 = vsub.f32 1.5, %v1594_v62  ;;  %2293 = vmatpush.bf16.msra.mxu3 %v3078_v63 }
 0x716   : > { %v3167_v5 = vpop.eup %3166  ;;  %v1590_v1 = vadd.f32 1e-06, %v1587_v2  ;;  %v3102_v2 = vld [vmem:[%s4096_s16 + $0xd0] sm:$0xff] }
 0x717   : > { %v1596_v7 = vmul.f32 %v3165_v58, %v1595_v4  ;;  %v1602_v8 = vmul.f32 %v3167_v5, %v1589_v59  ;;  %vm1608_vm1 = vweird.f32 %v3167_v5  ;;  %v3931_v59 = vperm.slane %v1670_v52, 2  ;;  %2347 = vmatpush.bf16.msra.mxu2 %v3102_v2 }
 0x718   : > { %3168 = vrsqrt.f32 %v1590_v1  ;;  %vm1609_vm3 = vmor %vm1607_vm2, %vm1608_vm1  ;;  %vm1617_vm5 = vweird.f32 %v1590_v1  ;;  %2329 = vmatpush.bf16.msra.mxu1 %v3094_v54 }
 0x719   : > { %v1603_v11 = vmul.f32 %v3167_v5, %v1602_v8  ;;  %v1600_v13 = vsel %vm1599_vm0, %v3165_v58, %v1596_v7  ;;  %v3929_v58 = vperm.slane %v1670_v52, 1  ;;  %v3084_v7 = vld [vmem:[%s4096_s16 + $0x40] sm:$0xff] }
 0x71a   : > { %v1621_v16 = vmul.f32 %v1600_v13, %v3640_v3  ;;  %v3092_v8 = vld [vmem:[%s4096_s16 + $0x80] sm:$0xff]  ;;  %v3959_v13 = vperm.slane %v1670_v52, 0 }
 0x71b   : > { %v1604_v14 = vmul.f32 0.5, %v1603_v11 }
 0x71c   : > { %v1627_v24 = vmul.f32 %v3128_v9, %v1621_v16  ;;  %2330 = vmatpush.bf16.msra.mxu1 %v3093_v61  ;;  %v3101_v16 = vld [vmem:[%s4096_s16 + $0xc8] sm:$0xff] }
 0x71d   : > { %v1605_v15 = vsub.f32 1.5, %v1604_v14  ;;  %2348 = vmatpush.bf16.msra.mxu2 %v3101_v16 }
 0x71e   : > { %v3169_v20 = vpop.eup %3168  ;;  %v1633_v28 = vadd.f32 %v3129_v25, %v1627_v24  ;;  %v3076_v24 = vld [vmem:[%s4096_s16] sm:$0xff] }
 0x71f   : > { %v1606_v18 = vmul.f32 %v3167_v5, %v1605_v15  ;;  %v1612_v19 = vmul.f32 %v3169_v20, %v1590_v1  ;;  %vm1618_vm4 = vweird.f32 %v3169_v20  ;;  %v3963_v15 = vperm.slane %v1670_v52, 3 }
 0x720   : > { %vm1619_vm6 = vmor %vm1617_vm5, %vm1618_vm4  ;;  %2331 = vmatpush.bf16.msra.mxu1 %v3092_v8 }
 0x721   : > { %v1610_v21 = vsel %vm1609_vm3, %v3167_v5, %v1606_v18  ;;  %v1613_v22 = vmul.f32 %v3169_v20, %v1612_v19 }
 0x722   : > { %v1622_v23 = vmul.f32 %v1610_v21, %v3646_v6 }
 0x723   : > { %v1614_v26 = vmul.f32 0.5, %v1613_v22 }
 0x724   : > { %v1628_v27 = vmul.f32 %v3128_v9, %v1622_v23 }
 0x725   : > { %v1615_v3 = vsub.f32 1.5, %v1614_v26 }
 0x726   : > { %v1634_v29 = vadd.f32 %v3129_v25, %v1628_v27 }
 0x727   : > { %v1616_v31 = vmul.f32 %v3169_v20, %v1615_v3 }
 0x728   : > { %v1636_v32 = vpack.c.bf16 %v1634_v29, %v1633_v28 }
 0x729   : > { %v1620_v33 = vsel %vm1619_vm6, %v3169_v20, %v1616_v31  ;;  %v3077_v20 = vld [vmem:[%s4096_s16 + $0x8] sm:$0xff] }
 0x72a   : > { %1848 = vmatmul.bf16.vlgmr.msrb.gmra.mxu3 %v1636_v32  ;;  %1866 = vmatmul.bf16.vlgmr.msrb.gmra.mxu0 %v1636_v32  ;;  %v1623_v6 = vmul.f32 %v1620_v33, %v3652_v10  ;;  %v3090_v10 = vld [vmem:[%s4096_s16 + $0x70] sm:$0xff] }
 0x72b   : > { %1884 = vmatmul.bf16.vlgmr.msrb.gmra.mxu1 %v1636_v32  ;;  %1902 = vmatmul.bf16.vlgmr.msrb.gmra.mxu2 %v1636_v32 }
 0x72c   : > { %v1629_v37 = vmul.f32 %v3128_v9, %v1623_v6  ;;  %2307 = vmatpush.bf16.msra.mxu0 %v3090_v10  ;;  %2294 = vmatpush.bf16.msra.mxu3 %v3077_v20 }
 0x72e   : > { %v1635_v12 = vadd.f32 %v3129_v25, %v1629_v37  ;;  %v3100_v25 = vld [vmem:[%s4096_s16 + $0xc0] sm:$0xff] }
 0x72f   : > { %2349 = vmatpush.bf16.msra.mxu2 %v3100_v25 }
 0x730   : > { %v1637_v38 = vpack.c.bf16 %v1635_v12, %v1635_v12  ;;  %2308 = vmatpush.bf16.msra.mxu0 %v3089_v45  ;;  %2295 = vmatpush.bf16.msra.mxu3 %v3076_v24 }
 0x734   : > { %2309 = vmatpush.bf16.msra.mxu0 %v3088_v48 }
 0x738   : > { %2310 = vmatpush.bf16.msra.mxu0 %v3087_v30 }
 0x73a   : > { %1853 = vmatmul.bf16.gmra.mxu3 %v1637_v38  ;;  %1871 = vmatmul.bf16.gmra.mxu0 %v1637_v38 }
 0x73b   : > { %1889 = vmatmul.bf16.gmra.mxu1 %v1637_v38  ;;  %1907 = vmatmul.bf16.gmra.mxu2 %v1637_v38 }
 0x73c   : > { %2311 = vmatpush.bf16.msra.mxu0 %v3086_v53 }
 0x740   : > { %2312 = vmatpush.bf16.msra.mxu0 %v3085_v60 }
 0x744   : > { %2313 = vmatpush.bf16.msra.mxu0 %v3084_v7 }
 0x7a7   : > { %v1867_v62 = vpop.f32.mrf.mxu0 }
 0x7a8   : > { %v3946_v4 = vadd.f32 %v1867_v62, %v3929_v58  ;;  %v1885_v5 = vpop.f32.mrf.mxu1 }
 0x7a9   : > { %v3949_v1 = vadd.f32 %v1885_v5, %v3931_v59 }
 0x7aa   : > { %v1913_v11 = vmul.f32 %v3946_v4, %v3946_v4 }
 0x7ab   : > { %v1914_v14 = vmul.f32 %v3949_v1, %v3949_v1 }
 0x7ac   : > { %v1925_v9 = vmul.f32 %v1913_v11, %v3946_v4 }
 0x7ad   : > { %v1926_v18 = vmul.f32 %v1914_v14, %v3949_v1  ;;  %v1849_v19 = vpop.f32.mrf.mxu3 }
 0x7ae   : > { %v1937_v21 = vmul.f32 0.044715, %v1925_v9  ;;  %v3974_v22 = vadd.f32 %v1849_v19, %v3959_v13  ;;  %v1903_v23 = vpop.f32.mrf.mxu2 }
 0x7af   : > { %v1938_v26 = vmul.f32 0.044715, %v1926_v18  ;;  %v3983_v27 = vadd.f32 %v1903_v23, %v3963_v15  ;;  %v1869_v3 = vpop.f32.mrf.mxu0 }
 0x7b0   : > { %v1949_v28 = vadd.f32 %v1937_v21, %v3946_v4  ;;  %v1912_v29 = vmul.f32 %v3974_v22, %v3974_v22  ;;  %v3989_v31 = vadd.f32 %v1869_v3, %v3929_v58  ;;  %v1887_v32 = vpop.f32.mrf.mxu1 }
 0x7b1   : > { %v1950_v33 = vadd.f32 %v1938_v26, %v3949_v1  ;;  %v1915_v6 = vmul.f32 %v3983_v27, %v3983_v27  ;;  %v3995_v37 = vadd.f32 %v1887_v32, %v3931_v59 }
 0x7b2   : > { %v1961_v12 = vmul.f32 0.7978846, %v1949_v28  ;;  %v1924_v38 = vmul.f32 %v1912_v29, %v3974_v22  ;;  %v1917_v40 = vmul.f32 %v3989_v31, %v3989_v31 }
 0x7b3   : > { %v1962_v41 = vmul.f32 0.7978846, %v1950_v33  ;;  %v1927_v10 = vmul.f32 %v1915_v6, %v3983_v27  ;;  %v1918_v42 = vmul.f32 %v3995_v37, %v3995_v37 }
 0x7b4   : > { %v1936_v43 = vmul.f32 0.044715, %v1924_v38  ;;  %v1929_v44 = vmul.f32 %v1917_v40, %v3989_v31  ;;  %3170 = vtanh.f32 %v1961_v12 }
 0x7b5   : > { %v1939_v45 = vmul.f32 0.044715, %v1927_v10  ;;  %v1930_v17 = vmul.f32 %v1918_v42, %v3995_v37  ;;  %v1851_v46 = vpop.f32.mrf.mxu3  ;;  %3172 = vtanh.f32 %v1962_v41 }
 0x7b6   : > { %v1948_v47 = vadd.f32 %v1936_v43, %v3974_v22  ;;  %v1941_v48 = vmul.f32 0.044715, %v1929_v44  ;;  %v4007_v49 = vadd.f32 %v1851_v46, %v3959_v13  ;;  %v1905_v34 = vpop.f32.mrf.mxu2 }
 0x7b7   : > { %v1951_v35 = vadd.f32 %v1939_v45, %v3983_v27  ;;  %v1942_v30 = vmul.f32 0.044715, %v1930_v17  ;;  %v4011_v36 = vadd.f32 %v1905_v34, %v3963_v15  ;;  %v1872_v39 = vpop.f32.mrf.mxu0 }
 0x7b8   : > { %v1960_v50 = vmul.f32 0.7978846, %v1948_v47  ;;  %v1953_v52 = vadd.f32 %v1941_v48, %v3989_v31  ;;  %v1916_v53 = vmul.f32 %v4007_v49, %v4007_v49  ;;  %v4017_v54 = vadd.f32 %v1872_v39, %v3929_v58  ;;  %v1890_v55 = vpop.f32.mrf.mxu1 }
 0x7b9   : > { %v1963_v57 = vmul.f32 0.7978846, %v1951_v35  ;;  %v1954_v60 = vadd.f32 %v1942_v30, %v3995_v37  ;;  %v1919_v61 = vmul.f32 %v4011_v36, %v4011_v36  ;;  %v4023_v62 = vadd.f32 %v1890_v55, %v3931_v59 }
 0x7ba   : > { %3174 = vtanh.f32 %v1960_v50  ;;  %v1965_v63 = vmul.f32 0.7978846, %v1953_v52  ;;  %v1928_v2 = vmul.f32 %v1916_v53, %v4007_v49  ;;  %v1921_v5 = vmul.f32 %v4017_v54, %v4017_v54  ;;  %v3171_v7 = vpop.eup %3170 }
 0x7bb   : > { %3176 = vtanh.f32 %v1963_v57  ;;  %v1966_v58 = vmul.f32 0.7978846, %v1954_v60  ;;  %v1931_v8 = vmul.f32 %v1919_v61, %v4011_v36  ;;  %v3173_v11 = vpop.eup %3172  ;;  %v1922_v16 = vmul.f32 %v4023_v62, %v4023_v62 }
 0x7bc   : > { %3178 = vtanh.f32 %v1965_v63  ;;  %v1940_v14 = vmul.f32 0.044715, %v1928_v2  ;;  %v1933_v20 = vmul.f32 %v1921_v5, %v4017_v54  ;;  %v1985_v18 = vadd.f32 1.0, %v3171_v7 }
 0x7bd   : > { %3180 = vtanh.f32 %v1966_v58  ;;  %v1943_v59 = vmul.f32 0.044715, %v1931_v8  ;;  %v1854_v9 = vpop.f32.mrf.mxu3  ;;  %v1986_v25 = vadd.f32 1.0, %v3173_v11  ;;  %v1934_v3 = vmul.f32 %v1922_v16, %v4023_v62 }
 0x7be   : > { %v1952_v19 = vadd.f32 %v1940_v14, %v4007_v49  ;;  %v1945_v21 = vmul.f32 0.044715, %v1933_v20  ;;  %v4034_v23 = vadd.f32 %v1854_v9, %v3959_v13  ;;  %v1908_v24 = vpop.f32.mrf.mxu2  ;;  %v1997_v43 = vmul.f32 0.5, %v1985_v18 }
 0x7bf   : > { %v1955_v26 = vadd.f32 %v1943_v59, %v4011_v36  ;;  %v4039_v28 = vadd.f32 %v1908_v24, %v3963_v15  ;;  %v1874_v29 = vpop.f32.mrf.mxu0  ;;  %v1946_v41 = vmul.f32 0.044715, %v1934_v3  ;;  %v1998_v17 = vmul.f32 0.5, %v1986_v25 }
 0x7c0   : > { %v3175_v32 = vpop.eup %3174  ;;  %v1964_v33 = vmul.f32 0.7978846, %v1952_v19  ;;  %v1920_v6 = vmul.f32 %v4034_v23, %v4034_v23  ;;  %v1892_v12 = vpop.f32.mrf.mxu1  ;;  %v1957_v38 = vadd.f32 %v1945_v21, %v4017_v54  ;;  %v2009_v61 = vmul.f32 %v1997_v43, %v3946_v4 }
 0x7c1   : > { %v3177_v13 = vpop.eup %3176  ;;  %v1967_v40 = vmul.f32 0.7978846, %v1955_v26  ;;  %v1923_v10 = vmul.f32 %v4039_v28, %v4039_v28  ;;  %v1984_v48 = vadd.f32 1.0, %v3175_v32  ;;  %v1958_v52 = vadd.f32 %v1946_v41, %v4023_v62 }
 0x7c2   : > { %v3179_v42 = vpop.eup %3178  ;;  %3182 = vtanh.f32 %v1964_v33  ;;  %v1932_v15 = vmul.f32 %v1920_v6, %v4034_v23  ;;  %v1969_v44 = vmul.f32 0.7978846, %v1957_v38  ;;  %v1987_v53 = vadd.f32 1.0, %v3177_v13 }
 0x7c3   : > { %v3181_v45 = vpop.eup %3180  ;;  %v1989_v46 = vadd.f32 1.0, %v3179_v42  ;;  %3184 = vtanh.f32 %v1967_v40  ;;  %v1935_v47 = vmul.f32 %v1923_v10, %v4039_v28  ;;  %v1970_v2 = vmul.f32 0.7978846, %v1958_v52 }
 0x7c4   : > { %v1990_v34 = vadd.f32 1.0, %v3181_v45  ;;  %v1944_v35 = vmul.f32 0.044715, %v1932_v15  ;;  %3186 = vtanh.f32 %v1969_v44  ;;  %v2010_v58 = vmul.f32 %v1998_v17, %v3949_v1 }
 0x7c5   : > { %v2001_v30 = vmul.f32 0.5, %v1989_v46  ;;  %v1947_v39 = vmul.f32 0.044715, %v1935_v47  ;;  %v1856_v50 = vpop.f32.mrf.mxu3  ;;  %v1996_v8 = vmul.f32 0.5, %v1984_v48  ;;  %3188 = vtanh.f32 %v1970_v2 }
 0x7c6   : > { %v2002_v55 = vmul.f32 0.5, %v1990_v34  ;;  %v1910_v57 = vpop.f32.mrf.mxu2  ;;  %v1956_v60 = vadd.f32 %v1944_v35, %v4034_v23  ;;  %v1999_v19 = vmul.f32 0.5, %v1987_v53 }
 0x7c7   : > { %v2013_v63 = vmul.f32 %v2001_v30, %v3989_v31  ;;  %v1959_v5 = vadd.f32 %v1947_v39, %v4039_v28  ;;  %v2008_v1 = vmul.f32 %v1996_v8, %v3974_v22 }
 0x7c8   : > { %v3183_v7 = vpop.eup %3182  ;;  %v2014_v11 = vmul.f32 %v2002_v55, %v3995_v37  ;;  %v1968_v14 = vmul.f32 0.7978846, %v1956_v60  ;;  %v2011_v26 = vmul.f32 %v1999_v19, %v3983_v27 }
 0x7c9   : > { %v3185_v20 = vpop.eup %3184  ;;  %v1988_v59 = vadd.f32 1.0, %v3183_v7  ;;  %v2021_v16 = vpack.c.bf16 %v2013_v63, %v2009_v61  ;;  %v1971_v9 = vmul.f32 0.7978846, %v1959_v5 }
 0x7ca   : > { %v3187_v18 = vpop.eup %3186  ;;  %v1991_v4 = vadd.f32 1.0, %v3185_v20  ;;  %v2022_v21 = vpack.c.bf16 %v2014_v11, %v2010_v58  ;;  %3190 = vtanh.f32 %v1968_v14 }
 0x7cb   : > { %v2000_v31 = vmul.f32 0.5, %v1988_v59  ;;  %2314 = vmatmul.bf16.vlgmr.msra.gmra.mxu0 %v2021_v16  ;;  %3192 = vtanh.f32 %v1971_v9  ;;  %v1993_v25 = vadd.f32 1.0, %v3187_v18  ;;  %v3189_v29 = vpop.eup %3188 }
 0x7cc   : > { %v2003_v24 = vmul.f32 0.5, %v1991_v4  ;;  %2332 = vmatmul.bf16.vlgmr.msra.gmra.mxu1 %v2022_v21  ;;  %v1994_v12 = vadd.f32 1.0, %v3189_v29 }
 0x7cd   : > { %v2012_v37 = vmul.f32 %v2000_v31, %v4007_v49  ;;  %v2005_v13 = vmul.f32 0.5, %v1993_v25 }
 0x7ce   : > { %v2015_v3 = vmul.f32 %v2003_v24, %v4011_v36  ;;  %v2006_v40 = vmul.f32 0.5, %v1994_v12 }
 0x7cf   : > { %v2020_v32 = vpack.c.bf16 %v2012_v37, %v2008_v1  ;;  %v2017_v22 = vmul.f32 %v2005_v13, %v4017_v54 }
 0x7d0   : > { %v3191_v33 = vpop.eup %3190  ;;  %v2023_v6 = vpack.c.bf16 %v2015_v3, %v2011_v26  ;;  %v2018_v49 = vmul.f32 %v2006_v40, %v4023_v62  ;;  %v3130_v62 = vld [vmem:[%s4097_s17] ss:$0 sm:$0xff] }
 0x7d1   : > { %v3193_v38 = vpop.eup %3192  ;;  %2296 = vmatmul.bf16.vlgmr.msra.gmra.mxu3 %v2020_v32  ;;  %v1992_v41 = vadd.f32 1.0, %v3191_v33  ;;  %v2025_v43 = vpack.c.bf16 %v2017_v22, %v2017_v22 }
 0x7d2   : > { %2350 = vmatmul.bf16.vlgmr.msra.gmra.mxu2 %v2023_v6  ;;  %v1995_v10 = vadd.f32 1.0, %v3193_v38  ;;  %v2026_v36 = vpack.c.bf16 %v2018_v49, %v2018_v49 }
 0x7d3   : > { %v2004_v42 = vmul.f32 0.5, %v1992_v41 }
 0x7d4   : > { %v2007_v27 = vmul.f32 0.5, %v1995_v10 }
 0x7d5   : > { %v2016_v15 = vmul.f32 %v2004_v42, %v4034_v23 }
 0x7d6   : > { %v2019_v44 = vmul.f32 %v2007_v27, %v4039_v28  ;;  %v3131_v28 = vld [vmem:[%s4098_s18] ss:$0 sm:$0xff] }
 0x7d7   : > { %v2024_v45 = vpack.c.bf16 %v2016_v15, %v2016_v15 }
 0x7d8   : > { %v2027_v17 = vpack.c.bf16 %v2019_v44, %v2019_v44 }
 0x7db   : > { %2319 = vmatmul.bf16.gmra.mxu0 %v2025_v43 }
 0x7dc   : > { %2337 = vmatmul.bf16.gmra.mxu1 %v2026_v36 }
 0x7e1   : > { %2301 = vmatmul.bf16.gmra.mxu3 %v2024_v45 }
 0x7e2   : > { %2355 = vmatmul.bf16.gmra.mxu2 %v2027_v17 }
 0x848   : > { %v2315_v46 = vpop.f32.mrf.mxu0 }
 0x849   : > { %v2333_v47 = vpop.f32.mrf.mxu1 }
 0x850   : > { %v2317_v48 = vpop.f32.mrf.mxu0 }
 0x851   : > { %v2335_v54 = vpop.f32.mrf.mxu1 }
 0x854   : > { %v2297_v34 = vpop.f32.mrf.mxu3 }
 0x855   : > { %v2298_v35 = vadd.f32 %v3130_v62, %v2297_v34  ;;  %v2351_v30 = vpop.f32.mrf.mxu2 }
 0x857   : > { %v2316_v23 = vadd.f32 %v2315_v46, %v2298_v35 }
 0x858   : > { %v2320_v39 = vpop.f32.mrf.mxu0 }
 0x859   : > { %v2334_v50 = vadd.f32 %v2333_v47, %v2316_v23  ;;  %v2338_v52 = vpop.f32.mrf.mxu1 }
 0x85b   : > { %v2352_v53 = vadd.f32 %v2351_v30, %v2334_v50 }
 0x85c   : > { %v2299_v55 = vpop.f32.mrf.mxu3 }
 0x85d   : > { %v2364_v57 = vmul.f32 %v3131_v28, %v2352_v53  ;;  %v2300_v60 = vadd.f32 %v3130_v62, %v2299_v55  ;;  %v2353_v61 = vpop.f32.mrf.mxu2 }
 0x85f   : > { %v2367_v63 = vadd.f32 %v2364_v57, %v3625_v51  ;;  %v2318_v2 = vadd.f32 %v2317_v48, %v2300_v60 }
 0x860   : > { %v2322_v5 = vpop.f32.mrf.mxu0 }
 0x861   : > { %2370 = vst [vmem:[%s602_s1] sm:$0xff] %v2367_v63  ;;  %v2336_v7 = vadd.f32 %v2335_v54, %v2318_v2  ;;  %v2340_v58 = vpop.f32.mrf.mxu1 }
 0x863   : > { %v2354_v8 = vadd.f32 %v2353_v61, %v2336_v7 }
 0x864   : > { %v2302_v11 = vpop.f32.mrf.mxu3 }
 0x865   : > { %v2365_v14 = vmul.f32 %v3131_v28, %v2354_v8  ;;  %v2303_v20 = vadd.f32 %v3130_v62, %v2302_v11  ;;  %v2356_v59 = vpop.f32.mrf.mxu2 }
 0x867   : > { %v2368_v16 = vadd.f32 %v2365_v14, %v3630_v56  ;;  %v2321_v9 = vadd.f32 %v2320_v39, %v2303_v20 }
 0x869   : > { %2371 = vst [vmem:[%s602_s1 + $0x8] sm:$0xff] %v2368_v16  ;;  %v2339_v18 = vadd.f32 %v2338_v52, %v2321_v9 }
 0x86b   : > { %v2357_v19 = vadd.f32 %v2356_v59, %v2339_v18 }
 0x86c   : > { %v2304_v4 = vpop.f32.mrf.mxu3 }
 0x86d   : > { %v2366_v21 = vmul.f32 %v3131_v28, %v2357_v19  ;;  %v2358_v31 = vpop.f32.mrf.mxu2 }
 0x86f   : > { %v2369_v51 = vadd.f32 %v2366_v21, %v3635_v0 }
 0x871   : > { %2372 = vst [vmem:[%s602_s1 + $0x10] sm:$0xff] %v2369_v51 }
 0x872 PF: > { %s29_s0 = sadd.s32 1, %s3200_s0  }
 0x873   : > { %p26_p4 = scmp.ge.s32.totalorder %s29_s0, 4  }
 0x875   :  { %28 = sbr.rel (!%p26_p4) target bundleno = 5 (0x5), region = 133 }

</bundles_post_ra>
